<compile_context>
chip_gen: v7x
topology: tpu7x:2x2x1
jax: 0.10.0
libtpu: 0.0.40
codegen_flags: <defaults>
</compile_context>

<pallas_src>
import functools

import numpy as np

import jax
import jax.numpy as jnp
from jax import lax
from jax.experimental import pallas as pl
from jax.experimental.pallas import tpu as pltpu


# ---------------------------------------------------------------------------
# Static boundary masks for the 9 taps of a 3x3 SAME conv over the flat lane
# axis (tap order (dh, dw) row-major).  Pure shape constants -> built host-side.
# ---------------------------------------------------------------------------
def _tap_masks(N, H, W):
    pos = np.arange(N * H * W)
    hh = (pos % (H * W)) // W
    ww = pos % W
    rows = []
    for dh in range(3):
        for dw in range(3):
            rows.append(((hh + dh - 1 >= 0) & (hh + dh - 1 < H) &
                         (ww + dw - 1 >= 0) & (ww + dw - 1 < W)))
    return jnp.asarray(np.stack(rows, 0).astype(np.float32))   # (9, N*H*W)


# ---------------------------------------------------------------------------
# Fused VIN forward kernel (lane-dense / transposed layout)
# ---------------------------------------------------------------------------
def _vin_kernel(s1_ref, s2_ref,                       # scalar prefetch (SMEM)
                x_ref, masks_ref, wh_ref, bh_ref, wr_ref, br_ref,
                wq0_ref, wqv_ref, bq_ref, fcw_ref, fcb_ref,
                out_ref,
                *, k, N, H, W):
    f32 = jnp.float32
    NHW = x_ref.shape[1]
    HW = H * W

    tap_masks = [masks_ref[t:t + 1, :] for t in range(9)]     # 9 x (1, NHW)

    def stencil(x):
        # x: (C, NHW) -> (9*C, NHW); row (t*C + c) is x[c] shifted by tap t
        # (lane roll on the XLU) and zeroed outside the image (VPU mask mul).
        pieces = []
        t = 0
        for dh in range(3):
            for dw in range(3):
                off = (dh - 1) * W + (dw - 1)
                if off == 0:
                    pieces.append(x)                  # centre tap: mask all-ones
                else:
                    rolled = pltpu.roll(x, shift=(-off) % NHW, axis=1)
                    pieces.append(rolled * tap_masks[t])
                t += 1
        return jnp.concatenate(pieces, axis=0)

    # ---- conv_h : (ch_h, NHW) = (ch_h, 9*ch_in) @ (9*ch_in, NHW) -----------
    h = jnp.dot(wh_ref[...], stencil(x_ref[...]),
                preferred_element_type=f32) + bh_ref[...]
    # ---- conv_r : (1, NHW) --------------------------------------------------
    r = jnp.dot(wr_ref[...], stencil(h),
                preferred_element_type=f32) + br_ref[...]
    # ---- conv_q, r-channel taps + bias (constant across VI iterations) ------
    q_r = jnp.dot(wq0_ref[...], stencil(r),
                  preferred_element_type=f32) + bq_ref[...]    # (ch_q, NHW)
    wqv = wqv_ref[...]                                         # (ch_q, 9), hoisted

    # ---- value iteration: v carried as a vreg-resident (1, NHW) value -------
    def vi_step(_, v):
        q = q_r + jnp.dot(wqv, stencil(v), preferred_element_type=f32)
        return jnp.max(q, axis=0, keepdims=True)

    v = lax.fori_loop(0, k, vi_step, jnp.zeros((1, NHW), f32), unroll=True)
    q = q_r + jnp.dot(wqv, stencil(v), preferred_element_type=f32)   # (ch_q, NHW)

    # ---- attention gather (one-hot matmul over the flat lane axis) + fc -----
    pos = lax.broadcasted_iota(jnp.int32, (1, NHW), 1)
    rows = []
    for n in range(N):                                 # N is small & static
        idx = n * HW + s1_ref[n] * W + s2_ref[n]
        rows.append((pos == idx).astype(f32))
    onehot = jnp.concatenate(rows, axis=0)             # (N, NHW)
    feat = jnp.dot(onehot, q.T, preferred_element_type=f32)          # (N, ch_q)
    out_ref[...] = jnp.dot(feat, fcw_ref[...],
                           preferred_element_type=f32) + fcb_ref[...]


# ---------------------------------------------------------------------------
# Wrapper: whole VIN forward in one pallas_call
# ---------------------------------------------------------------------------
def vin_forward(x_nchw, S1, S2, params, k=10):
    x = x_nchw.astype(jnp.float32)
    N, ch_in, H, W = x.shape
    NHW = N * H * W
    ch_h = params["w_h"].shape[-1]
    ch_q = params["w_q"].shape[-1]
    n_act = params["fc_w"].shape[-1]

    # lane-dense layout: channels on sublanes, flat (n, h, w) on lanes
    x_flat = jnp.transpose(x, (1, 0, 2, 3)).reshape(ch_in, NHW)
    masks = _tap_masks(N, H, W)                                     # (9, NHW)

    # conv weights pre-transposed to (Cout, 9*Cin); conv_q split into r / v taps
    wh_t = params["w_h"].reshape(9 * ch_in, ch_h).T.astype(jnp.float32)
    bh = params["b_h"].reshape(ch_h, 1).astype(jnp.float32)
    wr_t = params["w_r"].reshape(9 * ch_h, 1).T.astype(jnp.float32)
    br = params["b_r"].reshape(1, 1).astype(jnp.float32)
    wq0_t = params["w_q"][:, :, 0, :].reshape(9, ch_q).T.astype(jnp.float32)
    wqv_t = params["w_q"][:, :, 1, :].reshape(9, ch_q).T.astype(jnp.float32)
    bq = params["b_q"].reshape(ch_q, 1).astype(jnp.float32)
    fcw = params["fc_w"].astype(jnp.float32)
    fcb = params["fc_b"].reshape(1, n_act).astype(jnp.float32)

    kernel = functools.partial(_vin_kernel, k=k, N=N, H=H, W=W)

    def full(shape):
        return pl.BlockSpec(shape, lambda i, s1, s2: (0,) * len(shape))

    return pl.pallas_call(
        kernel,
        out_shape=jax.ShapeDtypeStruct((N, n_act), jnp.float32),
        grid_spec=pltpu.PrefetchScalarGridSpec(
            num_scalar_prefetch=2,
            grid=(1,),
            in_specs=[
                full((ch_in, NHW)),        # x_flat
                full((9, NHW)),            # tap masks
                full((ch_h, 9 * ch_in)),   # wh_t
                full((ch_h, 1)),           # bh
                full((1, 9 * ch_h)),       # wr_t
                full((1, 1)),              # br
                full((ch_q, 9)),           # wq0_t
                full((ch_q, 9)),           # wqv_t
                full((ch_q, 1)),           # bq
                full((ch_q, n_act)),       # fcw
                full((1, n_act)),          # fcb
            ],
            out_specs=full((N, n_act)),
        ),
        compiler_params=pltpu.CompilerParams(dimension_semantics=("arbitrary",)),
    )(S1.astype(jnp.int32), S2.astype(jnp.int32),
      x_flat, masks, wh_t, bh, wr_t, br, wq0_t, wqv_t, bq, fcw, fcb)


# ---------------------------------------------------------------------------
# Pure-JAX reference (mirrors the PyTorch forward semantics) for validation
# ---------------------------------------------------------------------------
def _conv_ref(x, w, b):
    return lax.conv_general_dilated(
        x, w, (1, 1), "SAME",
        dimension_numbers=("NHWC", "HWIO", "NHWC")) + b


def vin_reference(x_nchw, S1, S2, params, k=10):
    x = jnp.transpose(x_nchw, (0, 2, 3, 1)).astype(jnp.float32)
    h = _conv_ref(x, params["w_h"], params["b_h"])
    r = _conv_ref(h, params["w_r"], params["b_r"])
    v = jnp.zeros_like(r)
    for _ in range(k):
        q = _conv_ref(jnp.concatenate([r, v], -1), params["w_q"], params["b_q"])
        v = jnp.max(q, axis=-1, keepdims=True)
    q = _conv_ref(jnp.concatenate([r, v], -1), params["w_q"], params["b_q"])
    feat = q[jnp.arange(x.shape[0]), S1, S2, :]
    return feat @ params["fc_w"] + params["fc_b"]


if __name__ == "__main__":
    N, H, W = 2, 8, 8
    ch_in, ch_h, ch_q, n_act, k = 2, 16, 8, 8, 10

    key = jax.random.PRNGKey(0)
    keys = jax.random.split(key, 10)
    params = {
        "w_h": 0.2 * jax.random.normal(keys[0], (3, 3, ch_in, ch_h), jnp.float32),
        "b_h": 0.1 * jax.random.normal(keys[1], (ch_h,), jnp.float32),
        "w_r": 0.2 * jax.random.normal(keys[2], (3, 3, ch_h, 1), jnp.float32),
        "b_r": 0.1 * jax.random.normal(keys[3], (1,), jnp.float32),
        "w_q": 0.1 * jax.random.normal(keys[4], (3, 3, 2, ch_q), jnp.float32),
        "b_q": 0.1 * jax.random.normal(keys[5], (ch_q,), jnp.float32),
        "fc_w": 0.2 * jax.random.normal(keys[6], (ch_q, n_act), jnp.float32),
        "fc_b": 0.1 * jax.random.normal(keys[7], (n_act,), jnp.float32),
    }
    x = jax.random.normal(keys[8], (N, ch_in, H, W), jnp.float32)   # NCHW, like PyTorch
    S1 = jax.random.randint(keys[9], (N,), 0, H, dtype=jnp.int32)
    S2 = jax.random.randint(jax.random.fold_in(key, 123), (N,), 0, W, dtype=jnp.int32)

    fwd = jax.jit(functools.partial(vin_forward, k=k))
    out = jax.block_until_ready(fwd(x, S1, S2, params))

    ref = vin_reference(x, S1, S2, params, k=k)
    assert out.shape == (N, n_act), out.shape
    assert jnp.allclose(out, ref, atol=1e-3, rtol=1e-3), (out, ref)
    print("KERNEL_OK")
</pallas_src>

<mosaic_0001>
module attributes {stable_mosaic.version = 11 : i64} {
  func.func @_vin_kernel(%arg0: i32, %arg1: memref<2xi32, #tpu.memory_space<smem>>, %arg2: memref<2xi32, #tpu.memory_space<smem>>, %arg3: memref<2x128xf32, #tpu.memory_space<vmem>>, %arg4: memref<9x128xf32, #tpu.memory_space<vmem>>, %arg5: memref<16x18xf32, #tpu.memory_space<vmem>>, %arg6: memref<16x1xf32, #tpu.memory_space<vmem>>, %arg7: memref<1x144xf32, #tpu.memory_space<vmem>>, %arg8: memref<1x1xf32, #tpu.memory_space<vmem>>, %arg9: memref<8x9xf32, #tpu.memory_space<vmem>>, %arg10: memref<8x9xf32, #tpu.memory_space<vmem>>, %arg11: memref<8x1xf32, #tpu.memory_space<vmem>>, %arg12: memref<8x8xf32, #tpu.memory_space<vmem>>, %arg13: memref<1x8xf32, #tpu.memory_space<vmem>>, %arg14: memref<2x8xf32, #tpu.memory_space<vmem>>) attributes {dimension_semantics = [#tpu.dimension_semantics<arbitrary>], iteration_bounds = array<i64: 1>, scalar_prefetch = 2 : i64, scratch_operands = 0 : i64, tpu.core_type = #tpu.core_type<tc>, window_params = [{pipeline_mode = #tpu.pipeline_mode<synchronous>, transform_indices = @transform_0, window_bounds = array<i64: 2, 128>}, {pipeline_mode = #tpu.pipeline_mode<synchronous>, transform_indices = @transform_1, window_bounds = array<i64: 9, 128>}, {pipeline_mode = #tpu.pipeline_mode<synchronous>, transform_indices = @transform_2, window_bounds = array<i64: 16, 18>}, {pipeline_mode = #tpu.pipeline_mode<synchronous>, transform_indices = @transform_3, window_bounds = array<i64: 16, 1>}, {pipeline_mode = #tpu.pipeline_mode<synchronous>, transform_indices = @transform_4, window_bounds = array<i64: 1, 144>}, {pipeline_mode = #tpu.pipeline_mode<synchronous>, transform_indices = @transform_5, window_bounds = array<i64: 1, 1>}, {pipeline_mode = #tpu.pipeline_mode<synchronous>, transform_indices = @transform_6, window_bounds = array<i64: 8, 9>}, {pipeline_mode = #tpu.pipeline_mode<synchronous>, transform_indices = @transform_7, window_bounds = array<i64: 8, 9>}, {pipeline_mode = #tpu.pipeline_mode<synchronous>, transform_indices = @transform_8, window_bounds = array<i64: 8, 1>}, {pipeline_mode = #tpu.pipeline_mode<synchronous>, transform_indices = @transform_9, window_bounds = array<i64: 8, 8>}, {pipeline_mode = #tpu.pipeline_mode<synchronous>, transform_indices = @transform_10, window_bounds = array<i64: 1, 8>}, {pipeline_mode = #tpu.pipeline_mode<synchronous>, transform_indices = @transform_11, window_bounds = array<i64: 2, 8>}]} {
    %c0 = arith.constant 0 : index
    %c0_0 = arith.constant 0 : index
    %0 = vector.load %arg4[%c0, %c0_0] : memref<9x128xf32, #tpu.memory_space<vmem>>, vector<1x128xf32>
    %c1 = arith.constant 1 : index
    %c0_1 = arith.constant 0 : index
    %1 = vector.load %arg4[%c1, %c0_1] : memref<9x128xf32, #tpu.memory_space<vmem>>, vector<1x128xf32>
    %c2 = arith.constant 2 : index
    %c0_2 = arith.constant 0 : index
    %2 = vector.load %arg4[%c2, %c0_2] : memref<9x128xf32, #tpu.memory_space<vmem>>, vector<1x128xf32>
    %c3 = arith.constant 3 : index
    %c0_3 = arith.constant 0 : index
    %3 = vector.load %arg4[%c3, %c0_3] : memref<9x128xf32, #tpu.memory_space<vmem>>, vector<1x128xf32>
    %c5 = arith.constant 5 : index
    %c0_4 = arith.constant 0 : index
    %4 = vector.load %arg4[%c5, %c0_4] : memref<9x128xf32, #tpu.memory_space<vmem>>, vector<1x128xf32>
    %c6 = arith.constant 6 : index
    %c0_5 = arith.constant 0 : index
    %5 = vector.load %arg4[%c6, %c0_5] : memref<9x128xf32, #tpu.memory_space<vmem>>, vector<1x128xf32>
    %c7 = arith.constant 7 : index
    %c0_6 = arith.constant 0 : index
    %6 = vector.load %arg4[%c7, %c0_6] : memref<9x128xf32, #tpu.memory_space<vmem>>, vector<1x128xf32>
    %c8 = arith.constant 8 : index
    %c0_7 = arith.constant 0 : index
    %7 = vector.load %arg4[%c8, %c0_7] : memref<9x128xf32, #tpu.memory_space<vmem>>, vector<1x128xf32>
    %c0_8 = arith.constant 0 : index
    %c0_9 = arith.constant 0 : index
    %8 = vector.load %arg5[%c0_8, %c0_9] : memref<16x18xf32, #tpu.memory_space<vmem>>, vector<16x18xf32>
    %c0_10 = arith.constant 0 : index
    %c0_11 = arith.constant 0 : index
    %9 = vector.load %arg3[%c0_10, %c0_11] : memref<2x128xf32, #tpu.memory_space<vmem>>, vector<2x128xf32>
    %c9_i32 = arith.constant 9 : i32
    %10 = tpu.dynamic_rotate %9 by %c9_i32 dim 1 : vector<2x128xf32>, i32 -> vector<2x128xf32>
    %11 = vector.broadcast %0 : vector<1x128xf32> to vector<2x128xf32>
    %12 = arith.mulf %10, %11 : vector<2x128xf32>
    %c8_i32 = arith.constant 8 : i32
    %13 = tpu.dynamic_rotate %9 by %c8_i32 dim 1 : vector<2x128xf32>, i32 -> vector<2x128xf32>
    %14 = vector.broadcast %1 : vector<1x128xf32> to vector<2x128xf32>
    %15 = arith.mulf %13, %14 : vector<2x128xf32>
    %c7_i32 = arith.constant 7 : i32
    %16 = tpu.dynamic_rotate %9 by %c7_i32 dim 1 : vector<2x128xf32>, i32 -> vector<2x128xf32>
    %17 = vector.broadcast %2 : vector<1x128xf32> to vector<2x128xf32>
    %18 = arith.mulf %16, %17 : vector<2x128xf32>
    %c1_i32 = arith.constant 1 : i32
    %19 = tpu.dynamic_rotate %9 by %c1_i32 dim 1 : vector<2x128xf32>, i32 -> vector<2x128xf32>
    %20 = vector.broadcast %3 : vector<1x128xf32> to vector<2x128xf32>
    %21 = arith.mulf %19, %20 : vector<2x128xf32>
    %c127_i32 = arith.constant 127 : i32
    %22 = tpu.dynamic_rotate %9 by %c127_i32 dim 1 : vector<2x128xf32>, i32 -> vector<2x128xf32>
    %23 = vector.broadcast %4 : vector<1x128xf32> to vector<2x128xf32>
    %24 = arith.mulf %22, %23 : vector<2x128xf32>
    %c121_i32 = arith.constant 121 : i32
    %25 = tpu.dynamic_rotate %9 by %c121_i32 dim 1 : vector<2x128xf32>, i32 -> vector<2x128xf32>
    %26 = vector.broadcast %5 : vector<1x128xf32> to vector<2x128xf32>
    %27 = arith.mulf %25, %26 : vector<2x128xf32>
    %c120_i32 = arith.constant 120 : i32
    %28 = tpu.dynamic_rotate %9 by %c120_i32 dim 1 : vector<2x128xf32>, i32 -> vector<2x128xf32>
    %29 = vector.broadcast %6 : vector<1x128xf32> to vector<2x128xf32>
    %30 = arith.mulf %28, %29 : vector<2x128xf32>
    %c119_i32 = arith.constant 119 : i32
    %31 = tpu.dynamic_rotate %9 by %c119_i32 dim 1 : vector<2x128xf32>, i32 -> vector<2x128xf32>
    %32 = vector.broadcast %7 : vector<1x128xf32> to vector<2x128xf32>
    %33 = arith.mulf %31, %32 : vector<2x128xf32>
    %34 = tpu.concatenate %12, %15, %18, %21, %9, %24, %27, %30, %33 in 0 : vector<2x128xf32>, vector<2x128xf32>, vector<2x128xf32>, vector<2x128xf32>, vector<2x128xf32>, vector<2x128xf32>, vector<2x128xf32>, vector<2x128xf32>, vector<2x128xf32> -> vector<18x128xf32>
    %cst = arith.constant dense<0.000000e+00> : vector<16x128xf32>
    %35 = tpu.matmul %8, %34, %cst {dimension_numbers = #tpu.dot_dimension_numbers<[1], [0], [0], [1], [0, 0, 1, 1], [], []>} : vector<16x18xf32>, vector<18x128xf32>, vector<16x128xf32> -> vector<16x128xf32>
    %c0_12 = arith.constant 0 : index
    %c0_13 = arith.constant 0 : index
    %36 = vector.load %arg6[%c0_12, %c0_13] : memref<16x1xf32, #tpu.memory_space<vmem>>, vector<16x1xf32>
    %37 = vector.broadcast %36 : vector<16x1xf32> to vector<16x128xf32>
    %38 = arith.addf %35, %37 : vector<16x128xf32>
    %c0_14 = arith.constant 0 : index
    %c0_15 = arith.constant 0 : index
    %39 = vector.load %arg7[%c0_14, %c0_15] : memref<1x144xf32, #tpu.memory_space<vmem>>, vector<1x144xf32>
    %c9_i32_16 = arith.constant 9 : i32
    %40 = tpu.dynamic_rotate %38 by %c9_i32_16 dim 1 : vector<16x128xf32>, i32 -> vector<16x128xf32>
    %41 = vector.broadcast %0 : vector<1x128xf32> to vector<16x128xf32>
    %42 = arith.mulf %40, %41 : vector<16x128xf32>
    %c8_i32_17 = arith.constant 8 : i32
    %43 = tpu.dynamic_rotate %38 by %c8_i32_17 dim 1 : vector<16x128xf32>, i32 -> vector<16x128xf32>
    %44 = vector.broadcast %1 : vector<1x128xf32> to vector<16x128xf32>
    %45 = arith.mulf %43, %44 : vector<16x128xf32>
    %c7_i32_18 = arith.constant 7 : i32
    %46 = tpu.dynamic_rotate %38 by %c7_i32_18 dim 1 : vector<16x128xf32>, i32 -> vector<16x128xf32>
    %47 = vector.broadcast %2 : vector<1x128xf32> to vector<16x128xf32>
    %48 = arith.mulf %46, %47 : vector<16x128xf32>
    %c1_i32_19 = arith.constant 1 : i32
    %49 = tpu.dynamic_rotate %38 by %c1_i32_19 dim 1 : vector<16x128xf32>, i32 -> vector<16x128xf32>
    %50 = vector.broadcast %3 : vector<1x128xf32> to vector<16x128xf32>
    %51 = arith.mulf %49, %50 : vector<16x128xf32>
    %c127_i32_20 = arith.constant 127 : i32
    %52 = tpu.dynamic_rotate %38 by %c127_i32_20 dim 1 : vector<16x128xf32>, i32 -> vector<16x128xf32>
    %53 = vector.broadcast %4 : vector<1x128xf32> to vector<16x128xf32>
    %54 = arith.mulf %52, %53 : vector<16x128xf32>
    %c121_i32_21 = arith.constant 121 : i32
    %55 = tpu.dynamic_rotate %38 by %c121_i32_21 dim 1 : vector<16x128xf32>, i32 -> vector<16x128xf32>
    %56 = vector.broadcast %5 : vector<1x128xf32> to vector<16x128xf32>
    %57 = arith.mulf %55, %56 : vector<16x128xf32>
    %c120_i32_22 = arith.constant 120 : i32
    %58 = tpu.dynamic_rotate %38 by %c120_i32_22 dim 1 : vector<16x128xf32>, i32 -> vector<16x128xf32>
    %59 = vector.broadcast %6 : vector<1x128xf32> to vector<16x128xf32>
    %60 = arith.mulf %58, %59 : vector<16x128xf32>
    %c119_i32_23 = arith.constant 119 : i32
    %61 = tpu.dynamic_rotate %38 by %c119_i32_23 dim 1 : vector<16x128xf32>, i32 -> vector<16x128xf32>
    %62 = vector.broadcast %7 : vector<1x128xf32> to vector<16x128xf32>
    %63 = arith.mulf %61, %62 : vector<16x128xf32>
    %64 = tpu.concatenate %42, %45, %48, %51, %38, %54, %57, %60, %63 in 0 : vector<16x128xf32>, vector<16x128xf32>, vector<16x128xf32>, vector<16x128xf32>, vector<16x128xf32>, vector<16x128xf32>, vector<16x128xf32>, vector<16x128xf32>, vector<16x128xf32> -> vector<144x128xf32>
    %cst_24 = arith.constant dense<0.000000e+00> : vector<1x128xf32>
    %65 = tpu.matmul %39, %64, %cst_24 {dimension_numbers = #tpu.dot_dimension_numbers<[1], [0], [0], [1], [0, 0, 1, 1], [], []>} : vector<1x144xf32>, vector<144x128xf32>, vector<1x128xf32> -> vector<1x128xf32>
    %c0_25 = arith.constant 0 : index
    %c0_26 = arith.constant 0 : index
    %66 = vector.load %arg8[%c0_25, %c0_26] : memref<1x1xf32, #tpu.memory_space<vmem>>, vector<1x1xf32>
    %67 = vector.broadcast %66 : vector<1x1xf32> to vector<1x128xf32>
    %68 = arith.addf %65, %67 : vector<1x128xf32>
    %c0_27 = arith.constant 0 : index
    %c0_28 = arith.constant 0 : index
    %69 = vector.load %arg9[%c0_27, %c0_28] : memref<8x9xf32, #tpu.memory_space<vmem>>, vector<8x9xf32>
    %c9_i32_29 = arith.constant 9 : i32
    %70 = tpu.dynamic_rotate %68 by %c9_i32_29 dim 1 : vector<1x128xf32>, i32 -> vector<1x128xf32>
    %71 = arith.mulf %70, %0 : vector<1x128xf32>
    %c8_i32_30 = arith.constant 8 : i32
    %72 = tpu.dynamic_rotate %68 by %c8_i32_30 dim 1 : vector<1x128xf32>, i32 -> vector<1x128xf32>
    %73 = arith.mulf %72, %1 : vector<1x128xf32>
    %c7_i32_31 = arith.constant 7 : i32
    %74 = tpu.dynamic_rotate %68 by %c7_i32_31 dim 1 : vector<1x128xf32>, i32 -> vector<1x128xf32>
    %75 = arith.mulf %74, %2 : vector<1x128xf32>
    %c1_i32_32 = arith.constant 1 : i32
    %76 = tpu.dynamic_rotate %68 by %c1_i32_32 dim 1 : vector<1x128xf32>, i32 -> vector<1x128xf32>
    %77 = arith.mulf %76, %3 : vector<1x128xf32>
    %c127_i32_33 = arith.constant 127 : i32
    %78 = tpu.dynamic_rotate %68 by %c127_i32_33 dim 1 : vector<1x128xf32>, i32 -> vector<1x128xf32>
    %79 = arith.mulf %78, %4 : vector<1x128xf32>
    %c121_i32_34 = arith.constant 121 : i32
    %80 = tpu.dynamic_rotate %68 by %c121_i32_34 dim 1 : vector<1x128xf32>, i32 -> vector<1x128xf32>
    %81 = arith.mulf %80, %5 : vector<1x128xf32>
    %c120_i32_35 = arith.constant 120 : i32
    %82 = tpu.dynamic_rotate %68 by %c120_i32_35 dim 1 : vector<1x128xf32>, i32 -> vector<1x128xf32>
    %83 = arith.mulf %82, %6 : vector<1x128xf32>
    %c119_i32_36 = arith.constant 119 : i32
    %84 = tpu.dynamic_rotate %68 by %c119_i32_36 dim 1 : vector<1x128xf32>, i32 -> vector<1x128xf32>
    %85 = arith.mulf %84, %7 : vector<1x128xf32>
    %86 = tpu.concatenate %71, %73, %75, %77, %68, %79, %81, %83, %85 in 0 : vector<1x128xf32>, vector<1x128xf32>, vector<1x128xf32>, vector<1x128xf32>, vector<1x128xf32>, vector<1x128xf32>, vector<1x128xf32>, vector<1x128xf32>, vector<1x128xf32> -> vector<9x128xf32>
    %cst_37 = arith.constant dense<0.000000e+00> : vector<8x128xf32>
    %87 = tpu.matmul %69, %86, %cst_37 {dimension_numbers = #tpu.dot_dimension_numbers<[1], [0], [0], [1], [0, 0, 1, 1], [], []>} : vector<8x9xf32>, vector<9x128xf32>, vector<8x128xf32> -> vector<8x128xf32>
    %c0_38 = arith.constant 0 : index
    %c0_39 = arith.constant 0 : index
    %88 = vector.load %arg11[%c0_38, %c0_39] : memref<8x1xf32, #tpu.memory_space<vmem>>, vector<8x1xf32>
    %89 = vector.broadcast %88 : vector<8x1xf32> to vector<8x128xf32>
    %90 = arith.addf %87, %89 : vector<8x128xf32>
    %c0_40 = arith.constant 0 : index
    %c0_41 = arith.constant 0 : index
    %91 = vector.load %arg10[%c0_40, %c0_41] : memref<8x9xf32, #tpu.memory_space<vmem>>, vector<8x9xf32>
    %cst_42 = arith.constant 0.000000e+00 : f32
    %92 = vector.broadcast %cst_42 : f32 to vector<1x128xf32>
    %c0_i32 = arith.constant 0 : i32
    %c9_i32_43 = arith.constant 9 : i32
    %93 = tpu.dynamic_rotate %92 by %c9_i32_43 dim 1 : vector<1x128xf32>, i32 -> vector<1x128xf32>
    %94 = arith.mulf %93, %0 : vector<1x128xf32>
    %c8_i32_44 = arith.constant 8 : i32
    %95 = tpu.dynamic_rotate %92 by %c8_i32_44 dim 1 : vector<1x128xf32>, i32 -> vector<1x128xf32>
    %96 = arith.mulf %95, %1 : vector<1x128xf32>
    %c7_i32_45 = arith.constant 7 : i32
    %97 = tpu.dynamic_rotate %92 by %c7_i32_45 dim 1 : vector<1x128xf32>, i32 -> vector<1x128xf32>
    %98 = arith.mulf %97, %2 : vector<1x128xf32>
    %c1_i32_46 = arith.constant 1 : i32
    %99 = tpu.dynamic_rotate %92 by %c1_i32_46 dim 1 : vector<1x128xf32>, i32 -> vector<1x128xf32>
    %100 = arith.mulf %99, %3 : vector<1x128xf32>
    %c127_i32_47 = arith.constant 127 : i32
    %101 = tpu.dynamic_rotate %92 by %c127_i32_47 dim 1 : vector<1x128xf32>, i32 -> vector<1x128xf32>
    %102 = arith.mulf %101, %4 : vector<1x128xf32>
    %c121_i32_48 = arith.constant 121 : i32
    %103 = tpu.dynamic_rotate %92 by %c121_i32_48 dim 1 : vector<1x128xf32>, i32 -> vector<1x128xf32>
    %104 = arith.mulf %103, %5 : vector<1x128xf32>
    %c120_i32_49 = arith.constant 120 : i32
    %105 = tpu.dynamic_rotate %92 by %c120_i32_49 dim 1 : vector<1x128xf32>, i32 -> vector<1x128xf32>
    %106 = arith.mulf %105, %6 : vector<1x128xf32>
    %c119_i32_50 = arith.constant 119 : i32
    %107 = tpu.dynamic_rotate %92 by %c119_i32_50 dim 1 : vector<1x128xf32>, i32 -> vector<1x128xf32>
    %108 = arith.mulf %107, %7 : vector<1x128xf32>
    %109 = tpu.concatenate %94, %96, %98, %100, %92, %102, %104, %106, %108 in 0 : vector<1x128xf32>, vector<1x128xf32>, vector<1x128xf32>, vector<1x128xf32>, vector<1x128xf32>, vector<1x128xf32>, vector<1x128xf32>, vector<1x128xf32>, vector<1x128xf32> -> vector<9x128xf32>
    %cst_51 = arith.constant dense<0.000000e+00> : vector<8x128xf32>
    %110 = tpu.matmul %91, %109, %cst_51 {dimension_numbers = #tpu.dot_dimension_numbers<[1], [0], [0], [1], [0, 0, 1, 1], [], []>} : vector<8x9xf32>, vector<9x128xf32>, vector<8x128xf32> -> vector<8x128xf32>
    %111 = arith.addf %90, %110 : vector<8x128xf32>
    %cst_52 = arith.constant dense<0xFF800000> : vector<128xf32>
    %112 = vector.multi_reduction <maximumf>, %111, %cst_52 [0] : vector<8x128xf32> to vector<128xf32>
    %113 = vector.shape_cast %112 : vector<128xf32> to vector<1x128xf32>
    %c1_i32_53 = arith.constant 1 : i32
    %c9_i32_54 = arith.constant 9 : i32
    %114 = tpu.dynamic_rotate %113 by %c9_i32_54 dim 1 : vector<1x128xf32>, i32 -> vector<1x128xf32>
    %115 = arith.mulf %114, %0 : vector<1x128xf32>
    %c8_i32_55 = arith.constant 8 : i32
    %116 = tpu.dynamic_rotate %113 by %c8_i32_55 dim 1 : vector<1x128xf32>, i32 -> vector<1x128xf32>
    %117 = arith.mulf %116, %1 : vector<1x128xf32>
    %c7_i32_56 = arith.constant 7 : i32
    %118 = tpu.dynamic_rotate %113 by %c7_i32_56 dim 1 : vector<1x128xf32>, i32 -> vector<1x128xf32>
    %119 = arith.mulf %118, %2 : vector<1x128xf32>
    %c1_i32_57 = arith.constant 1 : i32
    %120 = tpu.dynamic_rotate %113 by %c1_i32_57 dim 1 : vector<1x128xf32>, i32 -> vector<1x128xf32>
    %121 = arith.mulf %120, %3 : vector<1x128xf32>
    %c127_i32_58 = arith.constant 127 : i32
    %122 = tpu.dynamic_rotate %113 by %c127_i32_58 dim 1 : vector<1x128xf32>, i32 -> vector<1x128xf32>
    %123 = arith.mulf %122, %4 : vector<1x128xf32>
    %c121_i32_59 = arith.constant 121 : i32
    %124 = tpu.dynamic_rotate %113 by %c121_i32_59 dim 1 : vector<1x128xf32>, i32 -> vector<1x128xf32>
    %125 = arith.mulf %124, %5 : vector<1x128xf32>
    %c120_i32_60 = arith.constant 120 : i32
    %126 = tpu.dynamic_rotate %113 by %c120_i32_60 dim 1 : vector<1x128xf32>, i32 -> vector<1x128xf32>
    %127 = arith.mulf %126, %6 : vector<1x128xf32>
    %c119_i32_61 = arith.constant 119 : i32
    %128 = tpu.dynamic_rotate %113 by %c119_i32_61 dim 1 : vector<1x128xf32>, i32 -> vector<1x128xf32>
    %129 = arith.mulf %128, %7 : vector<1x128xf32>
    %130 = tpu.concatenate %115, %117, %119, %121, %113, %123, %125, %127, %129 in 0 : vector<1x128xf32>, vector<1x128xf32>, vector<1x128xf32>, vector<1x128xf32>, vector<1x128xf32>, vector<1x128xf32>, vector<1x128xf32>, vector<1x128xf32>, vector<1x128xf32> -> vector<9x128xf32>
    %cst_62 = arith.constant dense<0.000000e+00> : vector<8x128xf32>
    %131 = tpu.matmul %91, %130, %cst_62 {dimension_numbers = #tpu.dot_dimension_numbers<[1], [0], [0], [1], [0, 0, 1, 1], [], []>} : vector<8x9xf32>, vector<9x128xf32>, vector<8x128xf32> -> vector<8x128xf32>
    %132 = arith.addf %90, %131 : vector<8x128xf32>
    %cst_63 = arith.constant dense<0xFF800000> : vector<128xf32>
    %133 = vector.multi_reduction <maximumf>, %132, %cst_63 [0] : vector<8x128xf32> to vector<128xf32>
    %134 = vector.shape_cast %133 : vector<128xf32> to vector<1x128xf32>
    %c2_i32 = arith.constant 2 : i32
    %c9_i32_64 = arith.constant 9 : i32
    %135 = tpu.dynamic_rotate %134 by %c9_i32_64 dim 1 : vector<1x128xf32>, i32 -> vector<1x128xf32>
    %136 = arith.mulf %135, %0 : vector<1x128xf32>
    %c8_i32_65 = arith.constant 8 : i32
    %137 = tpu.dynamic_rotate %134 by %c8_i32_65 dim 1 : vector<1x128xf32>, i32 -> vector<1x128xf32>
    %138 = arith.mulf %137, %1 : vector<1x128xf32>
    %c7_i32_66 = arith.constant 7 : i32
    %139 = tpu.dynamic_rotate %134 by %c7_i32_66 dim 1 : vector<1x128xf32>, i32 -> vector<1x128xf32>
    %140 = arith.mulf %139, %2 : vector<1x128xf32>
    %c1_i32_67 = arith.constant 1 : i32
    %141 = tpu.dynamic_rotate %134 by %c1_i32_67 dim 1 : vector<1x128xf32>, i32 -> vector<1x128xf32>
    %142 = arith.mulf %141, %3 : vector<1x128xf32>
    %c127_i32_68 = arith.constant 127 : i32
    %143 = tpu.dynamic_rotate %134 by %c127_i32_68 dim 1 : vector<1x128xf32>, i32 -> vector<1x128xf32>
    %144 = arith.mulf %143, %4 : vector<1x128xf32>
    %c121_i32_69 = arith.constant 121 : i32
    %145 = tpu.dynamic_rotate %134 by %c121_i32_69 dim 1 : vector<1x128xf32>, i32 -> vector<1x128xf32>
    %146 = arith.mulf %145, %5 : vector<1x128xf32>
    %c120_i32_70 = arith.constant 120 : i32
    %147 = tpu.dynamic_rotate %134 by %c120_i32_70 dim 1 : vector<1x128xf32>, i32 -> vector<1x128xf32>
    %148 = arith.mulf %147, %6 : vector<1x128xf32>
    %c119_i32_71 = arith.constant 119 : i32
    %149 = tpu.dynamic_rotate %134 by %c119_i32_71 dim 1 : vector<1x128xf32>, i32 -> vector<1x128xf32>
    %150 = arith.mulf %149, %7 : vector<1x128xf32>
    %151 = tpu.concatenate %136, %138, %140, %142, %134, %144, %146, %148, %150 in 0 : vector<1x128xf32>, vector<1x128xf32>, vector<1x128xf32>, vector<1x128xf32>, vector<1x128xf32>, vector<1x128xf32>, vector<1x128xf32>, vector<1x128xf32>, vector<1x128xf32> -> vector<9x128xf32>
    %cst_72 = arith.constant dense<0.000000e+00> : vector<8x128xf32>
    %152 = tpu.matmul %91, %151, %cst_72 {dimension_numbers = #tpu.dot_dimension_numbers<[1], [0], [0], [1], [0, 0, 1, 1], [], []>} : vector<8x9xf32>, vector<9x128xf32>, vector<8x128xf32> -> vector<8x128xf32>
    %153 = arith.addf %90, %152 : vector<8x128xf32>
    %cst_73 = arith.constant dense<0xFF800000> : vector<128xf32>
    %154 = vector.multi_reduction <maximumf>, %153, %cst_73 [0] : vector<8x128xf32> to vector<128xf32>
    %155 = vector.shape_cast %154 : vector<128xf32> to vector<1x128xf32>
    %c3_i32 = arith.constant 3 : i32
    %c9_i32_74 = arith.constant 9 : i32
    %156 = tpu.dynamic_rotate %155 by %c9_i32_74 dim 1 : vector<1x128xf32>, i32 -> vector<1x128xf32>
    %157 = arith.mulf %156, %0 : vector<1x128xf32>
    %c8_i32_75 = arith.constant 8 : i32
    %158 = tpu.dynamic_rotate %155 by %c8_i32_75 dim 1 : vector<1x128xf32>, i32 -> vector<1x128xf32>
    %159 = arith.mulf %158, %1 : vector<1x128xf32>
    %c7_i32_76 = arith.constant 7 : i32
    %160 = tpu.dynamic_rotate %155 by %c7_i32_76 dim 1 : vector<1x128xf32>, i32 -> vector<1x128xf32>
    %161 = arith.mulf %160, %2 : vector<1x128xf32>
    %c1_i32_77 = arith.constant 1 : i32
    %162 = tpu.dynamic_rotate %155 by %c1_i32_77 dim 1 : vector<1x128xf32>, i32 -> vector<1x128xf32>
    %163 = arith.mulf %162, %3 : vector<1x128xf32>
    %c127_i32_78 = arith.constant 127 : i32
    %164 = tpu.dynamic_rotate %155 by %c127_i32_78 dim 1 : vector<1x128xf32>, i32 -> vector<1x128xf32>
    %165 = arith.mulf %164, %4 : vector<1x128xf32>
    %c121_i32_79 = arith.constant 121 : i32
    %166 = tpu.dynamic_rotate %155 by %c121_i32_79 dim 1 : vector<1x128xf32>, i32 -> vector<1x128xf32>
    %167 = arith.mulf %166, %5 : vector<1x128xf32>
    %c120_i32_80 = arith.constant 120 : i32
    %168 = tpu.dynamic_rotate %155 by %c120_i32_80 dim 1 : vector<1x128xf32>, i32 -> vector<1x128xf32>
    %169 = arith.mulf %168, %6 : vector<1x128xf32>
    %c119_i32_81 = arith.constant 119 : i32
    %170 = tpu.dynamic_rotate %155 by %c119_i32_81 dim 1 : vector<1x128xf32>, i32 -> vector<1x128xf32>
    %171 = arith.mulf %170, %7 : vector<1x128xf32>
    %172 = tpu.concatenate %157, %159, %161, %163, %155, %165, %167, %169, %171 in 0 : vector<1x128xf32>, vector<1x128xf32>, vector<1x128xf32>, vector<1x128xf32>, vector<1x128xf32>, vector<1x128xf32>, vector<1x128xf32>, vector<1x128xf32>, vector<1x128xf32> -> vector<9x128xf32>
    %cst_82 = arith.constant dense<0.000000e+00> : vector<8x128xf32>
    %173 = tpu.matmul %91, %172, %cst_82 {dimension_numbers = #tpu.dot_dimension_numbers<[1], [0], [0], [1], [0, 0, 1, 1], [], []>} : vector<8x9xf32>, vector<9x128xf32>, vector<8x128xf32> -> vector<8x128xf32>
    %174 = arith.addf %90, %173 : vector<8x128xf32>
    %cst_83 = arith.constant dense<0xFF800000> : vector<128xf32>
    %175 = vector.multi_reduction <maximumf>, %174, %cst_83 [0] : vector<8x128xf32> to vector<128xf32>
    %176 = vector.shape_cast %175 : vector<128xf32> to vector<1x128xf32>
    %c4_i32 = arith.constant 4 : i32
    %c9_i32_84 = arith.constant 9 : i32
    %177 = tpu.dynamic_rotate %176 by %c9_i32_84 dim 1 : vector<1x128xf32>, i32 -> vector<1x128xf32>
    %178 = arith.mulf %177, %0 : vector<1x128xf32>
    %c8_i32_85 = arith.constant 8 : i32
    %179 = tpu.dynamic_rotate %176 by %c8_i32_85 dim 1 : vector<1x128xf32>, i32 -> vector<1x128xf32>
    %180 = arith.mulf %179, %1 : vector<1x128xf32>
    %c7_i32_86 = arith.constant 7 : i32
    %181 = tpu.dynamic_rotate %176 by %c7_i32_86 dim 1 : vector<1x128xf32>, i32 -> vector<1x128xf32>
    %182 = arith.mulf %181, %2 : vector<1x128xf32>
    %c1_i32_87 = arith.constant 1 : i32
    %183 = tpu.dynamic_rotate %176 by %c1_i32_87 dim 1 : vector<1x128xf32>, i32 -> vector<1x128xf32>
    %184 = arith.mulf %183, %3 : vector<1x128xf32>
    %c127_i32_88 = arith.constant 127 : i32
    %185 = tpu.dynamic_rotate %176 by %c127_i32_88 dim 1 : vector<1x128xf32>, i32 -> vector<1x128xf32>
    %186 = arith.mulf %185, %4 : vector<1x128xf32>
    %c121_i32_89 = arith.constant 121 : i32
    %187 = tpu.dynamic_rotate %176 by %c121_i32_89 dim 1 : vector<1x128xf32>, i32 -> vector<1x128xf32>
    %188 = arith.mulf %187, %5 : vector<1x128xf32>
    %c120_i32_90 = arith.constant 120 : i32
    %189 = tpu.dynamic_rotate %176 by %c120_i32_90 dim 1 : vector<1x128xf32>, i32 -> vector<1x128xf32>
    %190 = arith.mulf %189, %6 : vector<1x128xf32>
    %c119_i32_91 = arith.constant 119 : i32
    %191 = tpu.dynamic_rotate %176 by %c119_i32_91 dim 1 : vector<1x128xf32>, i32 -> vector<1x128xf32>
    %192 = arith.mulf %191, %7 : vector<1x128xf32>
    %193 = tpu.concatenate %178, %180, %182, %184, %176, %186, %188, %190, %192 in 0 : vector<1x128xf32>, vector<1x128xf32>, vector<1x128xf32>, vector<1x128xf32>, vector<1x128xf32>, vector<1x128xf32>, vector<1x128xf32>, vector<1x128xf32>, vector<1x128xf32> -> vector<9x128xf32>
    %cst_92 = arith.constant dense<0.000000e+00> : vector<8x128xf32>
    %194 = tpu.matmul %91, %193, %cst_92 {dimension_numbers = #tpu.dot_dimension_numbers<[1], [0], [0], [1], [0, 0, 1, 1], [], []>} : vector<8x9xf32>, vector<9x128xf32>, vector<8x128xf32> -> vector<8x128xf32>
    %195 = arith.addf %90, %194 : vector<8x128xf32>
    %cst_93 = arith.constant dense<0xFF800000> : vector<128xf32>
    %196 = vector.multi_reduction <maximumf>, %195, %cst_93 [0] : vector<8x128xf32> to vector<128xf32>
    %197 = vector.shape_cast %196 : vector<128xf32> to vector<1x128xf32>
    %c5_i32 = arith.constant 5 : i32
    %c9_i32_94 = arith.constant 9 : i32
    %198 = tpu.dynamic_rotate %197 by %c9_i32_94 dim 1 : vector<1x128xf32>, i32 -> vector<1x128xf32>
    %199 = arith.mulf %198, %0 : vector<1x128xf32>
    %c8_i32_95 = arith.constant 8 : i32
    %200 = tpu.dynamic_rotate %197 by %c8_i32_95 dim 1 : vector<1x128xf32>, i32 -> vector<1x128xf32>
    %201 = arith.mulf %200, %1 : vector<1x128xf32>
    %c7_i32_96 = arith.constant 7 : i32
    %202 = tpu.dynamic_rotate %197 by %c7_i32_96 dim 1 : vector<1x128xf32>, i32 -> vector<1x128xf32>
    %203 = arith.mulf %202, %2 : vector<1x128xf32>
    %c1_i32_97 = arith.constant 1 : i32
    %204 = tpu.dynamic_rotate %197 by %c1_i32_97 dim 1 : vector<1x128xf32>, i32 -> vector<1x128xf32>
    %205 = arith.mulf %204, %3 : vector<1x128xf32>
    %c127_i32_98 = arith.constant 127 : i32
    %206 = tpu.dynamic_rotate %197 by %c127_i32_98 dim 1 : vector<1x128xf32>, i32 -> vector<1x128xf32>
    %207 = arith.mulf %206, %4 : vector<1x128xf32>
    %c121_i32_99 = arith.constant 121 : i32
    %208 = tpu.dynamic_rotate %197 by %c121_i32_99 dim 1 : vector<1x128xf32>, i32 -> vector<1x128xf32>
    %209 = arith.mulf %208, %5 : vector<1x128xf32>
    %c120_i32_100 = arith.constant 120 : i32
    %210 = tpu.dynamic_rotate %197 by %c120_i32_100 dim 1 : vector<1x128xf32>, i32 -> vector<1x128xf32>
    %211 = arith.mulf %210, %6 : vector<1x128xf32>
    %c119_i32_101 = arith.constant 119 : i32
    %212 = tpu.dynamic_rotate %197 by %c119_i32_101 dim 1 : vector<1x128xf32>, i32 -> vector<1x128xf32>
    %213 = arith.mulf %212, %7 : vector<1x128xf32>
    %214 = tpu.concatenate %199, %201, %203, %205, %197, %207, %209, %211, %213 in 0 : vector<1x128xf32>, vector<1x128xf32>, vector<1x128xf32>, vector<1x128xf32>, vector<1x128xf32>, vector<1x128xf32>, vector<1x128xf32>, vector<1x128xf32>, vector<1x128xf32> -> vector<9x128xf32>
    %cst_102 = arith.constant dense<0.000000e+00> : vector<8x128xf32>
    %215 = tpu.matmul %91, %214, %cst_102 {dimension_numbers = #tpu.dot_dimension_numbers<[1], [0], [0], [1], [0, 0, 1, 1], [], []>} : vector<8x9xf32>, vector<9x128xf32>, vector<8x128xf32> -> vector<8x128xf32>
    %216 = arith.addf %90, %215 : vector<8x128xf32>
    %cst_103 = arith.constant dense<0xFF800000> : vector<128xf32>
    %217 = vector.multi_reduction <maximumf>, %216, %cst_103 [0] : vector<8x128xf32> to vector<128xf32>
    %218 = vector.shape_cast %217 : vector<128xf32> to vector<1x128xf32>
    %c6_i32 = arith.constant 6 : i32
    %c9_i32_104 = arith.constant 9 : i32
    %219 = tpu.dynamic_rotate %218 by %c9_i32_104 dim 1 : vector<1x128xf32>, i32 -> vector<1x128xf32>
    %220 = arith.mulf %219, %0 : vector<1x128xf32>
    %c8_i32_105 = arith.constant 8 : i32
    %221 = tpu.dynamic_rotate %218 by %c8_i32_105 dim 1 : vector<1x128xf32>, i32 -> vector<1x128xf32>
    %222 = arith.mulf %221, %1 : vector<1x128xf32>
    %c7_i32_106 = arith.constant 7 : i32
    %223 = tpu.dynamic_rotate %218 by %c7_i32_106 dim 1 : vector<1x128xf32>, i32 -> vector<1x128xf32>
    %224 = arith.mulf %223, %2 : vector<1x128xf32>
    %c1_i32_107 = arith.constant 1 : i32
    %225 = tpu.dynamic_rotate %218 by %c1_i32_107 dim 1 : vector<1x128xf32>, i32 -> vector<1x128xf32>
    %226 = arith.mulf %225, %3 : vector<1x128xf32>
    %c127_i32_108 = arith.constant 127 : i32
    %227 = tpu.dynamic_rotate %218 by %c127_i32_108 dim 1 : vector<1x128xf32>, i32 -> vector<1x128xf32>
    %228 = arith.mulf %227, %4 : vector<1x128xf32>
    %c121_i32_109 = arith.constant 121 : i32
    %229 = tpu.dynamic_rotate %218 by %c121_i32_109 dim 1 : vector<1x128xf32>, i32 -> vector<1x128xf32>
    %230 = arith.mulf %229, %5 : vector<1x128xf32>
    %c120_i32_110 = arith.constant 120 : i32
    %231 = tpu.dynamic_rotate %218 by %c120_i32_110 dim 1 : vector<1x128xf32>, i32 -> vector<1x128xf32>
    %232 = arith.mulf %231, %6 : vector<1x128xf32>
    %c119_i32_111 = arith.constant 119 : i32
    %233 = tpu.dynamic_rotate %218 by %c119_i32_111 dim 1 : vector<1x128xf32>, i32 -> vector<1x128xf32>
    %234 = arith.mulf %233, %7 : vector<1x128xf32>
    %235 = tpu.concatenate %220, %222, %224, %226, %218, %228, %230, %232, %234 in 0 : vector<1x128xf32>, vector<1x128xf32>, vector<1x128xf32>, vector<1x128xf32>, vector<1x128xf32>, vector<1x128xf32>, vector<1x128xf32>, vector<1x128xf32>, vector<1x128xf32> -> vector<9x128xf32>
    %cst_112 = arith.constant dense<0.000000e+00> : vector<8x128xf32>
    %236 = tpu.matmul %91, %235, %cst_112 {dimension_numbers = #tpu.dot_dimension_numbers<[1], [0], [0], [1], [0, 0, 1, 1], [], []>} : vector<8x9xf32>, vector<9x128xf32>, vector<8x128xf32> -> vector<8x128xf32>
    %237 = arith.addf %90, %236 : vector<8x128xf32>
    %cst_113 = arith.constant dense<0xFF800000> : vector<128xf32>
    %238 = vector.multi_reduction <maximumf>, %237, %cst_113 [0] : vector<8x128xf32> to vector<128xf32>
    %239 = vector.shape_cast %238 : vector<128xf32> to vector<1x128xf32>
    %c7_i32_114 = arith.constant 7 : i32
    %c9_i32_115 = arith.constant 9 : i32
    %240 = tpu.dynamic_rotate %239 by %c9_i32_115 dim 1 : vector<1x128xf32>, i32 -> vector<1x128xf32>
    %241 = arith.mulf %240, %0 : vector<1x128xf32>
    %c8_i32_116 = arith.constant 8 : i32
    %242 = tpu.dynamic_rotate %239 by %c8_i32_116 dim 1 : vector<1x128xf32>, i32 -> vector<1x128xf32>
    %243 = arith.mulf %242, %1 : vector<1x128xf32>
    %c7_i32_117 = arith.constant 7 : i32
    %244 = tpu.dynamic_rotate %239 by %c7_i32_117 dim 1 : vector<1x128xf32>, i32 -> vector<1x128xf32>
    %245 = arith.mulf %244, %2 : vector<1x128xf32>
    %c1_i32_118 = arith.constant 1 : i32
    %246 = tpu.dynamic_rotate %239 by %c1_i32_118 dim 1 : vector<1x128xf32>, i32 -> vector<1x128xf32>
    %247 = arith.mulf %246, %3 : vector<1x128xf32>
    %c127_i32_119 = arith.constant 127 : i32
    %248 = tpu.dynamic_rotate %239 by %c127_i32_119 dim 1 : vector<1x128xf32>, i32 -> vector<1x128xf32>
    %249 = arith.mulf %248, %4 : vector<1x128xf32>
    %c121_i32_120 = arith.constant 121 : i32
    %250 = tpu.dynamic_rotate %239 by %c121_i32_120 dim 1 : vector<1x128xf32>, i32 -> vector<1x128xf32>
    %251 = arith.mulf %250, %5 : vector<1x128xf32>
    %c120_i32_121 = arith.constant 120 : i32
    %252 = tpu.dynamic_rotate %239 by %c120_i32_121 dim 1 : vector<1x128xf32>, i32 -> vector<1x128xf32>
    %253 = arith.mulf %252, %6 : vector<1x128xf32>
    %c119_i32_122 = arith.constant 119 : i32
    %254 = tpu.dynamic_rotate %239 by %c119_i32_122 dim 1 : vector<1x128xf32>, i32 -> vector<1x128xf32>
    %255 = arith.mulf %254, %7 : vector<1x128xf32>
    %256 = tpu.concatenate %241, %243, %245, %247, %239, %249, %251, %253, %255 in 0 : vector<1x128xf32>, vector<1x128xf32>, vector<1x128xf32>, vector<1x128xf32>, vector<1x128xf32>, vector<1x128xf32>, vector<1x128xf32>, vector<1x128xf32>, vector<1x128xf32> -> vector<9x128xf32>
    %cst_123 = arith.constant dense<0.000000e+00> : vector<8x128xf32>
    %257 = tpu.matmul %91, %256, %cst_123 {dimension_numbers = #tpu.dot_dimension_numbers<[1], [0], [0], [1], [0, 0, 1, 1], [], []>} : vector<8x9xf32>, vector<9x128xf32>, vector<8x128xf32> -> vector<8x128xf32>
    %258 = arith.addf %90, %257 : vector<8x128xf32>
    %cst_124 = arith.constant dense<0xFF800000> : vector<128xf32>
    %259 = vector.multi_reduction <maximumf>, %258, %cst_124 [0] : vector<8x128xf32> to vector<128xf32>
    %260 = vector.shape_cast %259 : vector<128xf32> to vector<1x128xf32>
    %c8_i32_125 = arith.constant 8 : i32
    %c9_i32_126 = arith.constant 9 : i32
    %261 = tpu.dynamic_rotate %260 by %c9_i32_126 dim 1 : vector<1x128xf32>, i32 -> vector<1x128xf32>
    %262 = arith.mulf %261, %0 : vector<1x128xf32>
    %c8_i32_127 = arith.constant 8 : i32
    %263 = tpu.dynamic_rotate %260 by %c8_i32_127 dim 1 : vector<1x128xf32>, i32 -> vector<1x128xf32>
    %264 = arith.mulf %263, %1 : vector<1x128xf32>
    %c7_i32_128 = arith.constant 7 : i32
    %265 = tpu.dynamic_rotate %260 by %c7_i32_128 dim 1 : vector<1x128xf32>, i32 -> vector<1x128xf32>
    %266 = arith.mulf %265, %2 : vector<1x128xf32>
    %c1_i32_129 = arith.constant 1 : i32
    %267 = tpu.dynamic_rotate %260 by %c1_i32_129 dim 1 : vector<1x128xf32>, i32 -> vector<1x128xf32>
    %268 = arith.mulf %267, %3 : vector<1x128xf32>
    %c127_i32_130 = arith.constant 127 : i32
    %269 = tpu.dynamic_rotate %260 by %c127_i32_130 dim 1 : vector<1x128xf32>, i32 -> vector<1x128xf32>
    %270 = arith.mulf %269, %4 : vector<1x128xf32>
    %c121_i32_131 = arith.constant 121 : i32
    %271 = tpu.dynamic_rotate %260 by %c121_i32_131 dim 1 : vector<1x128xf32>, i32 -> vector<1x128xf32>
    %272 = arith.mulf %271, %5 : vector<1x128xf32>
    %c120_i32_132 = arith.constant 120 : i32
    %273 = tpu.dynamic_rotate %260 by %c120_i32_132 dim 1 : vector<1x128xf32>, i32 -> vector<1x128xf32>
    %274 = arith.mulf %273, %6 : vector<1x128xf32>
    %c119_i32_133 = arith.constant 119 : i32
    %275 = tpu.dynamic_rotate %260 by %c119_i32_133 dim 1 : vector<1x128xf32>, i32 -> vector<1x128xf32>
    %276 = arith.mulf %275, %7 : vector<1x128xf32>
    %277 = tpu.concatenate %262, %264, %266, %268, %260, %270, %272, %274, %276 in 0 : vector<1x128xf32>, vector<1x128xf32>, vector<1x128xf32>, vector<1x128xf32>, vector<1x128xf32>, vector<1x128xf32>, vector<1x128xf32>, vector<1x128xf32>, vector<1x128xf32> -> vector<9x128xf32>
    %cst_134 = arith.constant dense<0.000000e+00> : vector<8x128xf32>
    %278 = tpu.matmul %91, %277, %cst_134 {dimension_numbers = #tpu.dot_dimension_numbers<[1], [0], [0], [1], [0, 0, 1, 1], [], []>} : vector<8x9xf32>, vector<9x128xf32>, vector<8x128xf32> -> vector<8x128xf32>
    %279 = arith.addf %90, %278 : vector<8x128xf32>
    %cst_135 = arith.constant dense<0xFF800000> : vector<128xf32>
    %280 = vector.multi_reduction <maximumf>, %279, %cst_135 [0] : vector<8x128xf32> to vector<128xf32>
    %281 = vector.shape_cast %280 : vector<128xf32> to vector<1x128xf32>
    %c9_i32_136 = arith.constant 9 : i32
    %c9_i32_137 = arith.constant 9 : i32
    %282 = tpu.dynamic_rotate %281 by %c9_i32_137 dim 1 : vector<1x128xf32>, i32 -> vector<1x128xf32>
    %283 = arith.mulf %282, %0 : vector<1x128xf32>
    %c8_i32_138 = arith.constant 8 : i32
    %284 = tpu.dynamic_rotate %281 by %c8_i32_138 dim 1 : vector<1x128xf32>, i32 -> vector<1x128xf32>
    %285 = arith.mulf %284, %1 : vector<1x128xf32>
    %c7_i32_139 = arith.constant 7 : i32
    %286 = tpu.dynamic_rotate %281 by %c7_i32_139 dim 1 : vector<1x128xf32>, i32 -> vector<1x128xf32>
    %287 = arith.mulf %286, %2 : vector<1x128xf32>
    %c1_i32_140 = arith.constant 1 : i32
    %288 = tpu.dynamic_rotate %281 by %c1_i32_140 dim 1 : vector<1x128xf32>, i32 -> vector<1x128xf32>
    %289 = arith.mulf %288, %3 : vector<1x128xf32>
    %c127_i32_141 = arith.constant 127 : i32
    %290 = tpu.dynamic_rotate %281 by %c127_i32_141 dim 1 : vector<1x128xf32>, i32 -> vector<1x128xf32>
    %291 = arith.mulf %290, %4 : vector<1x128xf32>
    %c121_i32_142 = arith.constant 121 : i32
    %292 = tpu.dynamic_rotate %281 by %c121_i32_142 dim 1 : vector<1x128xf32>, i32 -> vector<1x128xf32>
    %293 = arith.mulf %292, %5 : vector<1x128xf32>
    %c120_i32_143 = arith.constant 120 : i32
    %294 = tpu.dynamic_rotate %281 by %c120_i32_143 dim 1 : vector<1x128xf32>, i32 -> vector<1x128xf32>
    %295 = arith.mulf %294, %6 : vector<1x128xf32>
    %c119_i32_144 = arith.constant 119 : i32
    %296 = tpu.dynamic_rotate %281 by %c119_i32_144 dim 1 : vector<1x128xf32>, i32 -> vector<1x128xf32>
    %297 = arith.mulf %296, %7 : vector<1x128xf32>
    %298 = tpu.concatenate %283, %285, %287, %289, %281, %291, %293, %295, %297 in 0 : vector<1x128xf32>, vector<1x128xf32>, vector<1x128xf32>, vector<1x128xf32>, vector<1x128xf32>, vector<1x128xf32>, vector<1x128xf32>, vector<1x128xf32>, vector<1x128xf32> -> vector<9x128xf32>
    %cst_145 = arith.constant dense<0.000000e+00> : vector<8x128xf32>
    %299 = tpu.matmul %91, %298, %cst_145 {dimension_numbers = #tpu.dot_dimension_numbers<[1], [0], [0], [1], [0, 0, 1, 1], [], []>} : vector<8x9xf32>, vector<9x128xf32>, vector<8x128xf32> -> vector<8x128xf32>
    %300 = arith.addf %90, %299 : vector<8x128xf32>
    %cst_146 = arith.constant dense<0xFF800000> : vector<128xf32>
    %301 = vector.multi_reduction <maximumf>, %300, %cst_146 [0] : vector<8x128xf32> to vector<128xf32>
    %302 = vector.shape_cast %301 : vector<128xf32> to vector<1x128xf32>
    %c9_i32_147 = arith.constant 9 : i32
    %303 = tpu.dynamic_rotate %302 by %c9_i32_147 dim 1 : vector<1x128xf32>, i32 -> vector<1x128xf32>
    %304 = arith.mulf %303, %0 : vector<1x128xf32>
    %c8_i32_148 = arith.constant 8 : i32
    %305 = tpu.dynamic_rotate %302 by %c8_i32_148 dim 1 : vector<1x128xf32>, i32 -> vector<1x128xf32>
    %306 = arith.mulf %305, %1 : vector<1x128xf32>
    %c7_i32_149 = arith.constant 7 : i32
    %307 = tpu.dynamic_rotate %302 by %c7_i32_149 dim 1 : vector<1x128xf32>, i32 -> vector<1x128xf32>
    %308 = arith.mulf %307, %2 : vector<1x128xf32>
    %c1_i32_150 = arith.constant 1 : i32
    %309 = tpu.dynamic_rotate %302 by %c1_i32_150 dim 1 : vector<1x128xf32>, i32 -> vector<1x128xf32>
    %310 = arith.mulf %309, %3 : vector<1x128xf32>
    %c127_i32_151 = arith.constant 127 : i32
    %311 = tpu.dynamic_rotate %302 by %c127_i32_151 dim 1 : vector<1x128xf32>, i32 -> vector<1x128xf32>
    %312 = arith.mulf %311, %4 : vector<1x128xf32>
    %c121_i32_152 = arith.constant 121 : i32
    %313 = tpu.dynamic_rotate %302 by %c121_i32_152 dim 1 : vector<1x128xf32>, i32 -> vector<1x128xf32>
    %314 = arith.mulf %313, %5 : vector<1x128xf32>
    %c120_i32_153 = arith.constant 120 : i32
    %315 = tpu.dynamic_rotate %302 by %c120_i32_153 dim 1 : vector<1x128xf32>, i32 -> vector<1x128xf32>
    %316 = arith.mulf %315, %6 : vector<1x128xf32>
    %c119_i32_154 = arith.constant 119 : i32
    %317 = tpu.dynamic_rotate %302 by %c119_i32_154 dim 1 : vector<1x128xf32>, i32 -> vector<1x128xf32>
    %318 = arith.mulf %317, %7 : vector<1x128xf32>
    %319 = tpu.concatenate %304, %306, %308, %310, %302, %312, %314, %316, %318 in 0 : vector<1x128xf32>, vector<1x128xf32>, vector<1x128xf32>, vector<1x128xf32>, vector<1x128xf32>, vector<1x128xf32>, vector<1x128xf32>, vector<1x128xf32>, vector<1x128xf32> -> vector<9x128xf32>
    %cst_155 = arith.constant dense<0.000000e+00> : vector<8x128xf32>
    %320 = tpu.matmul %91, %319, %cst_155 {dimension_numbers = #tpu.dot_dimension_numbers<[1], [0], [0], [1], [0, 0, 1, 1], [], []>} : vector<8x9xf32>, vector<9x128xf32>, vector<8x128xf32> -> vector<8x128xf32>
    %321 = arith.addf %90, %320 : vector<8x128xf32>
    %322 = tpu.iota {dimensions = array<i32: 1>} : vector<1x128xi32>
    %c0_156 = arith.constant 0 : index
    %323 = memref.load %arg1[%c0_156] : memref<2xi32, #tpu.memory_space<smem>>
    %c8_i32_157 = arith.constant 8 : i32
    %324 = arith.muli %323, %c8_i32_157 : i32
    %c0_i32_158 = arith.constant 0 : i32
    %325 = arith.addi %c0_i32_158, %324 : i32
    %c0_159 = arith.constant 0 : index
    %326 = memref.load %arg2[%c0_159] : memref<2xi32, #tpu.memory_space<smem>>
    %327 = arith.addi %325, %326 : i32
    %328 = vector.broadcast %327 : i32 to vector<1x128xi32>
    %329 = arith.cmpi eq, %322, %328 : vector<1x128xi32>
    %330 = arith.extui %329 : vector<1x128xi1> to vector<1x128xi32>
    %331 = arith.sitofp %330 : vector<1x128xi32> to vector<1x128xf32>
    %c1_160 = arith.constant 1 : index
    %332 = memref.load %arg1[%c1_160] : memref<2xi32, #tpu.memory_space<smem>>
    %c8_i32_161 = arith.constant 8 : i32
    %333 = arith.muli %332, %c8_i32_161 : i32
    %c64_i32 = arith.constant 64 : i32
    %334 = arith.addi %c64_i32, %333 : i32
    %c1_162 = arith.constant 1 : index
    %335 = memref.load %arg2[%c1_162] : memref<2xi32, #tpu.memory_space<smem>>
    %336 = arith.addi %334, %335 : i32
    %337 = vector.broadcast %336 : i32 to vector<1x128xi32>
    %338 = arith.cmpi eq, %322, %337 : vector<1x128xi32>
    %339 = arith.extui %338 : vector<1x128xi1> to vector<1x128xi32>
    %340 = arith.sitofp %339 : vector<1x128xi32> to vector<1x128xf32>
    %341 = tpu.concatenate %331, %340 in 0 : vector<1x128xf32>, vector<1x128xf32> -> vector<2x128xf32>
    %342 = tpu.transpose %321, [1, 0] : vector<8x128xf32> -> vector<128x8xf32>
    %cst_163 = arith.constant dense<0.000000e+00> : vector<2x8xf32>
    %343 = tpu.matmul %341, %342, %cst_163 {dimension_numbers = #tpu.dot_dimension_numbers<[1], [0], [0], [1], [0, 0, 1, 1], [], []>} : vector<2x128xf32>, vector<128x8xf32>, vector<2x8xf32> -> vector<2x8xf32>
    %c0_164 = arith.constant 0 : index
    %c0_165 = arith.constant 0 : index
    %344 = vector.load %arg12[%c0_164, %c0_165] : memref<8x8xf32, #tpu.memory_space<vmem>>, vector<8x8xf32>
    %cst_166 = arith.constant dense<0.000000e+00> : vector<2x8xf32>
    %345 = tpu.matmul %343, %344, %cst_166 {dimension_numbers = #tpu.dot_dimension_numbers<[1], [0], [0], [1], [0, 0, 1, 1], [], []>} : vector<2x8xf32>, vector<8x8xf32>, vector<2x8xf32> -> vector<2x8xf32>
    %c0_167 = arith.constant 0 : index
    %c0_168 = arith.constant 0 : index
    %346 = vector.load %arg13[%c0_167, %c0_168] : memref<1x8xf32, #tpu.memory_space<vmem>>, vector<1x8xf32>
    %347 = vector.broadcast %346 : vector<1x8xf32> to vector<2x8xf32>
    %348 = arith.addf %345, %347 : vector<2x8xf32>
    %c0_169 = arith.constant 0 : index
    %c0_170 = arith.constant 0 : index
    %349 = vector.load %arg14[%c0_169, %c0_170] : memref<2x8xf32, #tpu.memory_space<vmem>>, vector<2x8xf32>
    tpu.vector_store %arg14[%c0_169, %c0_170], %348 {strides = array<i32>} : memref<2x8xf32, #tpu.memory_space<vmem>>, vector<2x8xf32>,
    return
  }
  func.func @transform_0(%arg0: i32, %arg1: memref<2xi32, #tpu.memory_space<smem>>, %arg2: memref<2xi32, #tpu.memory_space<smem>>) -> (i32, i32) {
    %c0_i32 = arith.constant 0 : i32
    %c0_i32_0 = arith.constant 0 : i32
    %c0_i32_1 = arith.constant 0 : i32
    return %c0_i32, %c0_i32_0 : i32, i32
  }
  func.func @transform_1(%arg0: i32, %arg1: memref<2xi32, #tpu.memory_space<smem>>, %arg2: memref<2xi32, #tpu.memory_space<smem>>) -> (i32, i32) {
    %c0_i32 = arith.constant 0 : i32
    %c0_i32_0 = arith.constant 0 : i32
    %c0_i32_1 = arith.constant 0 : i32
    return %c0_i32, %c0_i32_0 : i32, i32
  }
  func.func @transform_2(%arg0: i32, %arg1: memref<2xi32, #tpu.memory_space<smem>>, %arg2: memref<2xi32, #tpu.memory_space<smem>>) -> (i32, i32) {
    %c0_i32 = arith.constant 0 : i32
    %c0_i32_0 = arith.constant 0 : i32
    %c0_i32_1 = arith.constant 0 : i32
    return %c0_i32, %c0_i32_0 : i32, i32
  }
  func.func @transform_3(%arg0: i32, %arg1: memref<2xi32, #tpu.memory_space<smem>>, %arg2: memref<2xi32, #tpu.memory_space<smem>>) -> (i32, i32) {
    %c0_i32 = arith.constant 0 : i32
    %c0_i32_0 = arith.constant 0 : i32
    %c0_i32_1 = arith.constant 0 : i32
    return %c0_i32, %c0_i32_0 : i32, i32
  }
  func.func @transform_4(%arg0: i32, %arg1: memref<2xi32, #tpu.memory_space<smem>>, %arg2: memref<2xi32, #tpu.memory_space<smem>>) -> (i32, i32) {
    %c0_i32 = arith.constant 0 : i32
    %c0_i32_0 = arith.constant 0 : i32
    %c0_i32_1 = arith.constant 0 : i32
    return %c0_i32, %c0_i32_0 : i32, i32
  }
  func.func @transform_5(%arg0: i32, %arg1: memref<2xi32, #tpu.memory_space<smem>>, %arg2: memref<2xi32, #tpu.memory_space<smem>>) -> (i32, i32) {
    %c0_i32 = arith.constant 0 : i32
    %c0_i32_0 = arith.constant 0 : i32
    %c0_i32_1 = arith.constant 0 : i32
    return %c0_i32, %c0_i32_0 : i32, i32
  }
  func.func @transform_6(%arg0: i32, %arg1: memref<2xi32, #tpu.memory_space<smem>>, %arg2: memref<2xi32, #tpu.memory_space<smem>>) -> (i32, i32) {
    %c0_i32 = arith.constant 0 : i32
    %c0_i32_0 = arith.constant 0 : i32
    %c0_i32_1 = arith.constant 0 : i32
    return %c0_i32, %c0_i32_0 : i32, i32
  }
  func.func @transform_7(%arg0: i32, %arg1: memref<2xi32, #tpu.memory_space<smem>>, %arg2: memref<2xi32, #tpu.memory_space<smem>>) -> (i32, i32) {
    %c0_i32 = arith.constant 0 : i32
    %c0_i32_0 = arith.constant 0 : i32
    %c0_i32_1 = arith.constant 0 : i32
    return %c0_i32, %c0_i32_0 : i32, i32
  }
  func.func @transform_8(%arg0: i32, %arg1: memref<2xi32, #tpu.memory_space<smem>>, %arg2: memref<2xi32, #tpu.memory_space<smem>>) -> (i32, i32) {
    %c0_i32 = arith.constant 0 : i32
    %c0_i32_0 = arith.constant 0 : i32
    %c0_i32_1 = arith.constant 0 : i32
    return %c0_i32, %c0_i32_0 : i32, i32
  }
  func.func @transform_9(%arg0: i32, %arg1: memref<2xi32, #tpu.memory_space<smem>>, %arg2: memref<2xi32, #tpu.memory_space<smem>>) -> (i32, i32) {
    %c0_i32 = arith.constant 0 : i32
    %c0_i32_0 = arith.constant 0 : i32
    %c0_i32_1 = arith.constant 0 : i32
    return %c0_i32, %c0_i32_0 : i32, i32
  }
  func.func @transform_10(%arg0: i32, %arg1: memref<2xi32, #tpu.memory_space<smem>>, %arg2: memref<2xi32, #tpu.memory_space<smem>>) -> (i32, i32) {
    %c0_i32 = arith.constant 0 : i32
    %c0_i32_0 = arith.constant 0 : i32
    %c0_i32_1 = arith.constant 0 : i32
    return %c0_i32, %c0_i32_0 : i32, i32
  }
  func.func @transform_11(%arg0: i32, %arg1: memref<2xi32, #tpu.memory_space<smem>>, %arg2: memref<2xi32, #tpu.memory_space<smem>>) -> (i32, i32) {
    %c0_i32 = arith.constant 0 : i32
    %c0_i32_0 = arith.constant 0 : i32
    %c0_i32_1 = arith.constant 0 : i32
    return %c0_i32, %c0_i32_0 : i32, i32
  }
}

</mosaic_0001>

<bundles_post_ra>
// kernel: squeeze.2
= control target key start
LH: loop header
LB: loop body
LE: loop exit
PB: predicated region body
PF: predicated region fallthrough
CT: control target
= control target key end

     0   :  { %vm16_vm0 = vcmask 64512   ;;  %s61_s0 = inlined_call_operand.vmem [shape: f32[3,3,8], index: 0, kind: input, shape index: {}]   ;;  %s62_s1 = inlined_call_operand.vmem [shape: f32[9,8], index: 1, kind: output, shape index: {}]  }
   0x1   :  { %v29_v0 = vld [vmem:[%s61_s0 + $0x8] sm:$0xf]  ;;  %v30_v1 = vld [vmem:[%s61_s0 + $0x4] sm:$0xf]  ;;  %v13_v2 = vld [vmem:[%s61_s0] sm:$0xf] }
   0x2   :  { %8 = vst [vmem:[#allocation0 + $0x10] sm:$0xf] %v29_v0  ;;  %12 = vst [vmem:[#allocation0 + $0x8] sm:$0xf] %v30_v1 }
   0x3   :  { %14 = vst [vmem:[#allocation0] sm:$0xf] %v13_v2 }
   0x9   :  { %v19_v4 = vld [vmem:[#allocation0 + $0x8] sm:$0x7]   ;;  %v24_v5 = vld [vmem:[#allocation0 + $0x10] sm:$0x7]  }
   0xa   :  { %v15_v3 = vld [vmem:[#allocation0] sm:$0x7]   ;;  %31 = vst.msk [vmem:[%s62_s1 + $0x3] sm:$0x7] %vm16_vm0, %v19_v4   ;;  %32 = vst.msk [vmem:[%s62_s1 + $0x6] sm:$0x7] %vm16_vm0, %v24_v5  }
   0xb   :  { %17 = vst.msk [vmem:[%s62_s1] sm:$0x7] %vm16_vm0, %v15_v3  }

// kernel: vin_forward.1
= control target key start
LH: loop header
LB: loop body
LE: loop exit
PB: predicated region body
PF: predicated region fallthrough
CT: control target
= control target key end

     0   :  { %s3235_s0 = inlined_call_operand.vmem [shape: s32[2], index: 0, kind: input, shape index: {}]   ;;  %s3236_s2 = inlined_call_operand.vmem [shape: f32[2,128], index: 2, kind: input, shape index: {}]   ;;  %s3237_s3 = inlined_call_operand.vmem [shape: f32[9,128], index: 3, kind: input, shape index: {}]   ;;  %s3238_s4 = inlined_call_operand.vmem [shape: f32[16,18], index: 4, kind: input, shape index: {}]   ;;  %s3239_s5 = inlined_call_operand.vmem [shape: f32[16,1], index: 5, kind: input, shape index: {}]   ;;  %s3240_s6 = inlined_call_operand.vmem [shape: f32[1,144], index: 6, kind: input, shape index: {}]   ;;  %s3241_s8 = inlined_call_operand.vmem [shape: f32[8,9], index: 8, kind: input, shape index: {}]   ;;  %s3242_s9 = inlined_call_operand.vmem [shape: f32[8,9], index: 9, kind: input, shape index: {}]   ;;  %s3243_s10 = inlined_call_operand.vmem [shape: f32[8,1], index: 10, kind: input, shape index: {}]   ;;  %s3244_s11 = inlined_call_operand.vmem [shape: f32[8,8], index: 11, kind: input, shape index: {}]   ;;  %s3245_s12 = inlined_call_operand.vmem [shape: f32[1,8], index: 12, kind: input, shape index: {}]   ;;  %s3246_s13 = inlined_call_operand.hbm [shape: f32[2,8], index: 13, kind: output, shape index: {}]   ;;  %s3247_s1 = inlined_call_operand.vmem [shape: s32[2], index: 1, kind: input, shape index: {}]   ;;  %s3248_s7 = inlined_call_operand.<no memory space> [shape: f32[1,1], index: 7, kind: input, shape index: {}]  }
   0x1   :  { %s18_s27 = sshll.u32 %s3235_s0, 4  ;;  %s22_s30 = sshll.u32 %s3247_s1, 4  ;;  %v26_v0 = vstv %s3248_s7  ;;  %s19_s27 = int_to_ptr.vmem [resolvable:$true] %s18_s27  ;;  %s23_s30 = int_to_ptr.vmem [resolvable:$true] %s22_s30 }
   0x2   :  { %27 = vst [vmem:[#allocation5] sm:$0x1] %v26_v0  ;;  %s2421_s16 = scalar_lea.vmem %s19_s27, 16  ;;  %p2426_p1 = scmp.lt.s32.totalorder %s19_s27, %s19_s27 }
   0x3   :  { %p2422_p0 = scmp.ne.s32.totalorder %s19_s27, %s2421_s16  ;;  %p2427_p2 = scmp.lt.s32.totalorder %s2421_s16, %s2421_s16 }
   0x5   :  { %p2428_p3 = por %p2427_p2, %p2426_p1 }
   0x7   :  { %p2429_p4 = pnand %p2428_p3, %p2422_p0 }
   0x9   :  { %2432 = shalt.err (!%p2429_p4)  }
   0xa   :  { %s2471_s17 = smov [#allocation3]   ;;  %s2433_s0 = scalar_lea.vmem %s23_s30, 16 }
   0xb   :  { %21 = dma.vmem_to_smem %s19_s27, 16, %s2471_s17, [#allocation2] }
   0xc   :  { %p2434_p5 = scmp.ne.s32.totalorder %s23_s30, %s2433_s0  ;;  %p2438_p6 = scmp.lt.s32.totalorder %s23_s30, %s23_s30 }
   0xd   :  { %p2439_p7 = scmp.lt.s32.totalorder %s2433_s0, %s2433_s0 }
   0xf   :  { %p2440_p8 = por %p2439_p7, %p2438_p6 }
  0x11   :  { %p2441_p9 = pnand %p2440_p8, %p2434_p5 }
  0x13   :  { %2444 = shalt.err (!%p2441_p9)  }
  0x14   :  { %s2472_s1 = smov [#allocation4]  }
  0x15   :  { %25 = dma.vmem_to_smem %s23_s30, 16, %s2472_s1, [#allocation2] }
  0x16   :  { %2467 = dma.done.wait [#allocation2], 32 }
  0x17   :  { %2468 = vsyncadd [#allocation2], 4294967264 }
  0x18   :  { %29 = sfence }
  0x19   :  { %v2569_v1 = vld [vmem:[%s3236_s2] sm:$0x3]  ;;  %s2473_s19 = smov 7   ;;  %s2474_s20 = smov 8  }
  0x1a   :  { %78 = vrot.lane.b32.xlu1 %v2569_v1, %s2473_s19  ;;  %71 = vrot.lane.b32.xlu0 %v2569_v1, %s2474_s20  ;;  %s2475_s21 = smov 121   ;;  %s2476_s22 = smov 127  }
  0x1e   :  { %99 = vrot.lane.b32.xlu1 %v2569_v1, %s2475_s21  ;;  %92 = vrot.lane.b32.xlu0 %v2569_v1, %s2476_s22 }
  0x1f   :  { %30 = vsyncpa [#allocation7], 0  ;;  %s2477_s23 = smov 1   ;;  %s2478_s2 = smov 9   ;;  %v61_v2 = vld [vmem:[%s3238_s4] sm:$0xff]  ;;  %vm159_vm0 = vcmask 146432   ;;  %v66_v6 = vlaneseq }
  0x20   :  { %2218 = vmatprep.mubr.msk.f32.mxu0 %vm159_vm0, %v61_v2  ;;  %s2479_s26 = smov 120   ;;  %s2480_s27 = smov 119   ;;  %v2481_v3 = vmov 0   ;;  %v148_v4 = vld [vmem:[%s3239_s5 + $0x8] sm:$0xff]  ;;  %v147_v5 = vld [vmem:[%s3239_s5] sm:$0xff]  ;;  %vm138_vm1 = vcmask 1041408  }
  0x21   :  { %2411 = vset.pattern.permute.xlu1 %v2481_v3  ;;  %2410 = vset.pattern.permute.xlu0 %v2481_v3  ;;  %v2598_v7 = vshrl.u32 %v66_v6, 7  ;;  %v2606_v9 = vld [vmem:[%s3237_s3 + $0x1] sm:$0x1]  ;;  %v2611_v10 = vld [vmem:[%s3237_s3 + $0x5] sm:$0x1]  ;;  %vm140_vm2 = vcmask 1043456  }
  0x22   :  { %85 = vrot.lane.b32.xlu1 %v2569_v1, %s2477_s23  ;;  %64 = vrot.lane.b32.xlu0 %v2569_v1, %s2478_s2  ;;  %v2616_v13 = vld [vmem:[%s3237_s3 + $0x2] sm:$0x1]  ;;  %v2625_v15 = vld [vmem:[%s3237_s3 + $0x6] sm:$0x1]  ;;  %vm142_vm3 = vcmask 1045504   ;;  %v2482_v55 = vmov 0.0|0.0  }
  0x23   :  { %v2601_v8 = vsub.s32 0, %v2598_v7  ;;  %v2634_v17 = vld [vmem:[%s3237_s3 + $0x3] sm:$0x1]  ;;  %v2639_v18 = vld [vmem:[%s3237_s3] sm:$0x1]  ;;  %v62_v54 = vld [vmem:[%s3238_s4 + $0x8] sm:$0xff]  ;;  %2319 = vmatprep.subr.bf16.mxu1 %v2482_v55 }
  0x24   :  { %v2662_v27 = vld [vmem:[%s3237_s3 + $0x7] sm:$0x1]  ;;  %v2676_v38 = vld [vmem:[%s3237_s3 + $0x8] sm:$0x1]  ;;  %v310_v63 = vsub.s32 1, %v2598_v7  ;;  %vm313_vm4 = vcmask 130048  }
  0x25   :  { %v2620_v14 = vrot.slane %v2606_v9, %v2601_v8  ;;  %v2629_v16 = vrot.slane %v2611_v10, %v2601_v8  ;;  %v2643_v19 = vrot.slane %v2616_v13, %v2601_v8  ;;  %v2647_v21 = vrot.slane %v2625_v15, %v2601_v8  ;;  %v2732_v0 = vld [vmem:[%s3240_s6] sm:$0x3]  ;;  %s2486_s28 = smov [#allocation6]  }
  0x26   :  { %106 = vrot.lane.b32.xlu0 %v2569_v1, %s2479_s26  ;;  %113 = vrot.lane.b32.xlu1 %v2569_v1, %s2480_s27  ;;  %v2653_v25 = vrot.slane %v2634_v17, %v2601_v8  ;;  %v2657_v26 = vrot.slane %v2639_v18, %v2601_v8  ;;  %v2668_v32 = vrot.slane %v2662_v27, %v2601_v8  ;;  %v293_v2 = vld [vmem:[#allocation5] sm:$0x1]  ;;  %v2483_v3 = vmov 0.0   ;;  %s2123_s29 = sshll.u32 %s2486_s28, 4  ;;  %s2124_s29 = int_to_ptr.vmem [resolvable:$true] %s2123_s29 }
  0x27   :  { %v2684_v46 = vrot.slane %v2676_v38, %v2601_v8  ;;  %vm2484_vm5 = vmmov 0   ;;  %vm432_vm6 = vcmask 1040384   ;;  %vm435_vm7 = vcmask 1042432   ;;  %s2445_s30 = scalar_lea.vmem %s2124_s29, 32  ;;  %p2450_p11 = scmp.lt.s32.totalorder %s2124_s29, %s2124_s29 }
  0x28   :  { %vm438_vm8 = vcmask 1044480   ;;  %vm441_vm9 = vcmask 1046528   ;;  %vm2485_vm10 = vmmov 1   ;;  %vm449_vm12 = vcmask 72704   ;;  %p2446_p10 = scmp.ne.s32.totalorder %s2124_s29, %s2445_s30  ;;  %p2451_p12 = scmp.lt.s32.totalorder %s2445_s30, %s2445_s30 }
  0x29   :  { %vm2826_vm11 = vmpackc.low %vm432_vm6, %vm2485_vm10  ;;  %vm2041_vm15 = vcmask 64512  }
  0x2a   :  { %156 = vperm.xlu1 %2411, %v148_v4   ;;  %151 = vperm.xlu0 %2410, %v147_v5   ;;  %p2452_p13 = por %p2451_p12, %p2450_p11 }
  0x2c   :  { %p2453_p0 = pnand %p2452_p13, %p2446_p10 }
  0x8c   :  { %v79_v11 = vpop.permute.xlu1 %78  ;;  %v72_v12 = vpop.permute.xlu0 %71 }
  0x8d   :  { %v77_v23 = vmul.f32 %v2620_v14, %v72_v12  ;;  %v84_v28 = vmul.f32 %v2643_v19, %v79_v11 }
  0x8f   :  { %v121_v33 = vrot.slane %v77_v23, 6  ;;  %v124_v39 = vrot.slane %v84_v28, 4 }
  0x90   :  { %v100_v20 = vpop.permute.xlu1 %99  ;;  %v93_v22 = vpop.permute.xlu0 %92 }
  0x91   :  { %v98_v24 = vmul.f32 %v2629_v16, %v93_v22  ;;  %v105_v29 = vmul.f32 %v2647_v21, %v100_v20 }
  0x93   :  { %v130_v34 = vrot.slane %v98_v24, 6  ;;  %v133_v40 = vrot.slane %v105_v29, 4 }
  0x94   :  { %v86_v30 = vpop.permute.xlu1 %85  ;;  %v65_v31 = vpop.permute.xlu0 %64 }
  0x95   :  { %v91_v35 = vmul.f32 %v2653_v25, %v86_v30  ;;  %v70_v36 = vmul.f32 %v2657_v26, %v65_v31  ;;  %v144_v42 = vsel %vm138_vm1, %v2569_v1, %v130_v34  ;;  %v311_v1 = vrot.slane %v2732_v0, %v310_v63 }
  0x96   :  { %v145_v49 = vsel %vm140_vm2, %v144_v42, %v133_v40 }
  0x97   :  { %v139_v37 = vsel %vm138_vm1, %v70_v36, %v121_v33  ;;  %v127_v43 = vrot.slane %v91_v35, 2  ;;  %2134 = vmatprep.mubr.msk.f32.mxu1 %vm313_vm4, %v311_v1 }
  0x98   :  { %v107_v41 = vpop.permute.xlu0 %106  ;;  %v141_v45 = vsel %vm140_vm2, %v139_v37, %v124_v39  ;;  %v114_v48 = vpop.permute.xlu1 %113 }
  0x99   :  { %v112_v44 = vmul.f32 %v2668_v32, %v107_v41  ;;  %v143_v50 = vsel %vm142_vm3, %v141_v45, %v127_v43  ;;  %v119_v53 = vmul.f32 %v2684_v46, %v114_v48 }
  0x9b   :  { %v136_v47 = vrot.slane %v112_v44, 2 }
  0x9d   :  { %v146_v51 = vsel %vm142_vm3, %v145_v49, %v136_v47 }
  0x9e   :  { %v2315_v52 = vpack.c.bf16 %v146_v51, %v143_v50 }
  0xa0   :  { %2316 = vmatprep.subr.bf16.mxu0 %v2315_v52 }
  0xa1   :  { %2318 = vmatpush3.bf16.msra.mxu0 %v2315_v52 }
  0xa2   :  { %2216 = vmatprep.subr.msk.mxu0 %vm138_vm1, %v119_v53 }
  0xa5   :  { %2217 = vmatpush3.msk.msra.mxu0 %vm138_vm1, %v119_v53 }
  0xa6   :  { %2219 = vmatmul.mubr.msk.f32.vlgmr.msra.gmra.mrb[0].mxu0 %vm159_vm0, %v62_v54  ;;  %2346 = vmatprep.subr.bf16.mxu0 %v2482_v55  ;;  %vm2115_vm0 = vcmask 58368  }
  0xa7   :  { %2225 = vmatprep.mubr.msk.f32.mxu0 %vm2484_vm5, %v2483_v3 }
  0xa9   :  { %v157_v56 = vpop.permute.xlu1 %156  ;;  %v152_v57 = vpop.permute.xlu0 %151 }
 0x179   :  { %v2220_v58 = vpop.f32.mrb[0].mxu0 }
 0x17a   :  { %v2698_v59 = vadd.f32 %v2220_v58, %v157_v56  ;;  %v235_v60 = vpop.f32.mrb[1].mxu0 }
 0x17b   :  { %v2700_v61 = vadd.f32 %v235_v60, %v152_v57  ;;  %v307_v57 = vrot.slane %v2732_v0, %v2601_v8 }
 0x17c   :  { %247 = vrot.lane.b32.xlu0 %v2698_v59, %s2478_s2 }
 0x17d   :  { %245 = vrot.lane.b32.xlu1 %v2700_v61, %s2478_s2  ;;  %v2332_v62 = vpack.c.bf16 %v2698_v59, %v2700_v61 }
 0x180   :  { %253 = vrot.lane.b32.xlu0 %v2698_v59, %s2474_s20 }
 0x181   :  { %251 = vrot.lane.b32.xlu1 %v2700_v61, %s2474_s20 }
 0x184   :  { %259 = vrot.lane.b32.xlu0 %v2698_v59, %s2473_s19 }
 0x185   :  { %257 = vrot.lane.b32.xlu1 %v2700_v61, %s2473_s19 }
 0x188   :  { %265 = vrot.lane.b32.xlu0 %v2698_v59, %s2477_s23 }
 0x189   :  { %263 = vrot.lane.b32.xlu1 %v2700_v61, %s2477_s23 }
 0x18c   :  { %271 = vrot.lane.b32.xlu0 %v2698_v59, %s2476_s22 }
 0x18d   :  { %269 = vrot.lane.b32.xlu1 %v2700_v61, %s2476_s22 }
 0x190   :  { %277 = vrot.lane.b32.xlu0 %v2698_v59, %s2475_s21 }
 0x191   :  { %275 = vrot.lane.b32.xlu1 %v2700_v61, %s2475_s21 }
 0x194   :  { %283 = vrot.lane.b32.xlu0 %v2698_v59, %s2479_s26 }
 0x195   :  { %281 = vrot.lane.b32.xlu1 %v2700_v61, %s2479_s26 }
 0x198   :  { %289 = vrot.lane.b32.xlu0 %v2698_v59, %s2480_s27 }
 0x199   :  { %287 = vrot.lane.b32.xlu1 %v2700_v61, %s2480_s27 }
 0x19c   :  { %536 = vrot.lane.b32.xlu0 %v2483_v3, %s2477_s23 }
 0x19d   :  { %296 = vperm.xlu1 %2411, %v293_v2  }
 0x1a1   :  { %530 = vrot.lane.b32.xlu1 %v2483_v3, %s2474_s20 }
 0x1a5   :  { %533 = vrot.lane.b32.xlu1 %v2483_v3, %s2473_s19 }
 0x1a9   :  { %527 = vrot.lane.b32.xlu1 %v2483_v3, %s2478_s2 }
 0x1ee   :  { %v248_v4 = vpop.permute.xlu0 %247 }
 0x1ef   :  { %v250_v5 = vmul.f32 %v248_v4, %v2657_v26  ;;  %v246_v7 = vpop.permute.xlu1 %245 }
 0x1f0   :  { %v249_v11 = vmul.f32 %v246_v7, %v2657_v26 }
 0x1f2   :  { %v254_v12 = vpop.permute.xlu0 %253  ;;  %v2320_v20 = vpack.c.bf16 %v250_v5, %v249_v11 }
 0x1f3   :  { %v256_v22 = vmul.f32 %v254_v12, %v2620_v14  ;;  %v252_v23 = vpop.permute.xlu1 %251 }
 0x1f4   :  { %v255_v24 = vmul.f32 %v252_v23, %v2620_v14  ;;  %2321 = vmatpush1.bf16.msra.mxu1 %v2320_v20 }
 0x1f5   :  { %2322 = vmatprep.subr.bf16.mxu1 %v2482_v55 }
 0x1f6   :  { %v2323_v28 = vpack.c.bf16 %v256_v22, %v255_v24  ;;  %v260_v29 = vpop.permute.xlu0 %259 }
 0x1f7   :  { %v262_v30 = vmul.f32 %v260_v29, %v2643_v19  ;;  %v258_v31 = vpop.permute.xlu1 %257 }
 0x1f8   :  { %v261_v33 = vmul.f32 %v258_v31, %v2643_v19  ;;  %2324 = vmatpush1.bf16.msra.mxu1 %v2323_v28 }
 0x1f9   :  { %2325 = vmatprep.subr.bf16.mxu1 %v2482_v55 }
 0x1fa   :  { %v2326_v26 = vpack.c.bf16 %v262_v30, %v261_v33  ;;  %v266_v34 = vpop.permute.xlu0 %265 }
 0x1fb   :  { %v268_v35 = vmul.f32 %v266_v34, %v2653_v25  ;;  %v264_v36 = vpop.permute.xlu1 %263 }
 0x1fc   :  { %v267_v14 = vmul.f32 %v264_v36, %v2653_v25  ;;  %2327 = vmatpush1.bf16.msra.mxu1 %v2326_v26 }
 0x1fd   :  { %2328 = vmatprep.subr.bf16.mxu1 %v2482_v55 }
 0x1fe   :  { %v2329_v37 = vpack.c.bf16 %v268_v35, %v267_v14  ;;  %v272_v39 = vpop.permute.xlu0 %271 }
 0x1ff   :  { %v270_v40 = vpop.permute.xlu1 %269  ;;  %v274_v19 = vmul.f32 %v272_v39, %v2629_v16 }
 0x200   :  { %2330 = vmatpush1.bf16.msra.mxu1 %v2329_v37  ;;  %v273_v41 = vmul.f32 %v270_v40, %v2629_v16 }
 0x201   :  { %2331 = vmatprep.subr.bf16.mxu1 %v2482_v55 }
 0x202   :  { %v278_v42 = vpop.permute.xlu0 %277  ;;  %v2335_v44 = vpack.c.bf16 %v274_v19, %v273_v41 }
 0x203   :  { %v276_v43 = vpop.permute.xlu1 %275  ;;  %v280_v25 = vmul.f32 %v278_v42, %v2647_v21 }
 0x204   :  { %2333 = vmatpush1.bf16.msra.mxu1 %v2332_v62  ;;  %v279_v45 = vmul.f32 %v276_v43, %v2647_v21 }
 0x205   :  { %2334 = vmatprep.subr.bf16.mxu1 %v2482_v55 }
 0x206   :  { %v284_v47 = vpop.permute.xlu0 %283  ;;  %v2338_v49 = vpack.c.bf16 %v280_v25, %v279_v45 }
 0x207   :  { %v282_v48 = vpop.permute.xlu1 %281  ;;  %v286_v50 = vmul.f32 %v284_v47, %v2668_v32 }
 0x208   :  { %2336 = vmatpush1.bf16.msra.mxu1 %v2335_v44  ;;  %v285_v16 = vmul.f32 %v282_v48, %v2668_v32 }
 0x209   :  { %2337 = vmatprep.subr.bf16.mxu1 %v2482_v55 }
 0x20a   :  { %v290_v51 = vpop.permute.xlu0 %289  ;;  %v2341_v53 = vpack.c.bf16 %v286_v50, %v285_v16 }
 0x20b   :  { %v288_v52 = vpop.permute.xlu1 %287  ;;  %v292_v54 = vmul.f32 %v290_v51, %v2684_v46 }
 0x20c   :  { %2339 = vmatpush1.bf16.msra.mxu1 %v2338_v49  ;;  %v291_v21 = vmul.f32 %v288_v52, %v2684_v46 }
 0x20d   :  { %2340 = vmatprep.subr.bf16.mxu1 %v2482_v55 }
 0x20e   :  { %v2344_v56 = vpack.c.bf16 %v292_v54, %v291_v21  ;;  %v537_v63 = vpop.permute.xlu0 %536 }
 0x20f   :  { %v538_v39 = vmul.f32 %v537_v63, %v2634_v17  ;;  %v386_v63 = vld [vmem:[%s3241_s8] sm:$0xff] }
 0x210   :  { %2342 = vmatpush1.bf16.msra.mxu1 %v2341_v53 }
 0x211   :  { %2343 = vmatprep.subr.bf16.mxu1 %v2482_v55  ;;  %v558_v48 = vrot.slane %v538_v39, 5 }
 0x214   :  { %2345 = vmatpush1.bf16.msra.mxu1 %v2344_v56 }
 0x215   :  { %2378 = vmatprep.subr.bf16.mxu1 %v2482_v55 }
 0x217   :  { %381 = vmatmul.mubr.f32.vlgmr.msra.gmra.mrb[0].mxu1 %v307_v57 }
 0x218   :  { %2281 = vmatprep.mubr.msk.f32.mxu1 %vm2484_vm5, %v2483_v3 }
 0x21c   :  { %v297_v32 = vpop.permute.xlu1 %296 }
 0x21d   :  { %v302_v58 = vrot.slane %v297_v32, %v2601_v8  ;;  %v443_v8 = vld [vmem:[%s3243_s10] sm:$0xff]  ;;  %v1944_v32 = vand.u32 127, %v66_v6 }
 0x21e   :  { %v2165_v6 = vld [vmem:[%s3245_s12] ss:$0 sm:$0xff] }
 0x220   :  { %v531_v46 = vpop.permute.xlu1 %530 }
 0x221   :  { %v532_v24 = vmul.f32 %v531_v46, %v2606_v9 }
 0x223   :  { %v552_v36 = vrot.slane %v532_v24, 7 }
 0x224   :  { %v534_v62 = vpop.permute.xlu1 %533 }
 0x225   :  { %v535_v26 = vmul.f32 %v534_v62, %v2616_v13 }
 0x227   :  { %v555_v41 = vrot.slane %v535_v26, 6 }
 0x228   :  { %v528_v0 = vpop.permute.xlu1 %527 }
 0x229   :  { %v529_v14 = vmul.f32 %v528_v0, %v2639_v18 }
 0x22b   :  { %v569_v25 = vsel %vm432_vm6, %v529_v14, %v552_v36 }
 0x22c   :  { %v570_v52 = vsel %vm138_vm1, %v569_v25, %v555_v41 }
 0x2ea   :  { %v382_v59 = vpop.f32.mrb[0].mxu1 }
 0x2eb   :  { %v383_v60 = vadd.f32 %v382_v59, %v302_v58  ;;  %v384_v61 = vpop.f32.mrb[1].mxu1  ;;  %v571_v58 = vsel %vm435_vm7, %v570_v52, %v558_v48 }
 0x2ec   :  { %v572_v0 = vsel %vm140_vm2, %v571_v58, 0.0 }
 0x2ed   :  { %393 = vrot.lane.b32.xlu1 %v383_v60, %s2473_s19  ;;  %390 = vrot.lane.b32.xlu0 %v383_v60, %s2474_s20  ;;  %v421_v42 = vrot.slane %v383_v60, 4 }
 0x2f1   :  { %396 = vrot.lane.b32.xlu1 %v383_v60, %s2477_s23  ;;  %387 = vrot.lane.b32.xlu0 %v383_v60, %s2478_s2 }
 0x2f5   :  { %539 = vrot.lane.b32.xlu1 %v2483_v3, %s2476_s22  ;;  %399 = vrot.lane.b32.xlu0 %v383_v60, %s2476_s22 }
 0x2f9   :  { %542 = vrot.lane.b32.xlu1 %v2483_v3, %s2475_s21  ;;  %402 = vrot.lane.b32.xlu0 %v383_v60, %s2475_s21 }
 0x2fd   :  { %405 = vrot.lane.b32.xlu0 %v383_v60, %s2479_s26  ;;  %548 = vrot.lane.b32.xlu1 %v2483_v3, %s2480_s27 }
 0x301   :  { %408 = vrot.lane.b32.xlu0 %v383_v60, %s2480_s27 }
 0x305   :  { %545 = vrot.lane.b32.xlu0 %v2483_v3, %s2479_s26 }
 0x309   :  { %446 = vperm.xlu0 %2410, %v443_v8  }
 0x35f   :  { %v394_v1 = vpop.permute.xlu1 %393  ;;  %v391_v2 = vpop.permute.xlu0 %390 }
 0x360   :  { %v392_v4 = vmul.f32 %v391_v2, %v2606_v9  ;;  %v395_v12 = vmul.f32 %v394_v1, %v2616_v13 }
 0x362   :  { %v412_v20 = vrot.slane %v392_v4, 7  ;;  %v415_v29 = vrot.slane %v395_v12, 6  ;;  %v2851_v12 = vld [vmem:[%s3242_s9] sm:$0xff] }
 0x363   :  { %v397_v5 = vpop.permute.xlu1 %396  ;;  %v388_v7 = vpop.permute.xlu0 %387 }
 0x364   :  { %v389_v11 = vmul.f32 %v388_v7, %v2639_v18  ;;  %v398_v22 = vmul.f32 %v397_v5, %v2634_v17 }
 0x366   :  { %v433_v28 = vsel %vm432_vm6, %v389_v11, %v412_v20  ;;  %v418_v30 = vrot.slane %v398_v22, 5 }
 0x367   :  { %v400_v23 = vpop.permute.xlu0 %399  ;;  %v540_v31 = vpop.permute.xlu1 %539  ;;  %v434_v34 = vsel %vm138_vm1, %v433_v28, %v415_v29 }
 0x368   :  { %v401_v33 = vmul.f32 %v400_v23, %v2611_v10  ;;  %v436_v40 = vsel %vm435_vm7, %v434_v34, %v418_v30  ;;  %v541_v50 = vmul.f32 %v540_v31, %v2611_v10 }
 0x369   :  { %v437_v49 = vsel %vm140_vm2, %v436_v40, %v421_v42 }
 0x36a   :  { %v424_v19 = vrot.slane %v401_v33, 3  ;;  %v561_v59 = vrot.slane %v541_v50, 3 }
 0x36b   :  { %v403_v35 = vpop.permute.xlu0 %402  ;;  %v543_v45 = vpop.permute.xlu1 %542 }
 0x36c   :  { %v404_v37 = vmul.f32 %v403_v35, %v2625_v15  ;;  %v439_v16 = vsel %vm438_vm8, %v437_v49, %v424_v19  ;;  %v544_v53 = vmul.f32 %v543_v45, %v2625_v15  ;;  %v573_v2 = vsel %vm438_vm8, %v572_v0, %v561_v59 }
 0x36e   :  { %v427_v43 = vrot.slane %v404_v37, 2  ;;  %v564_v8 = vrot.slane %v544_v53, 2 }
 0x36f   :  { %v406_v44 = vpop.permute.xlu0 %405  ;;  %v549_v61 = vpop.permute.xlu1 %548 }
 0x370   :  { %v407_v47 = vmul.f32 %v406_v44, %v2662_v27  ;;  %v440_v54 = vsel %vm142_vm3, %v439_v16, %v427_v43  ;;  %v550_v1 = vmul.f32 %v549_v61, %v2676_v38  ;;  %v574_v5 = vsel %vm142_vm3, %v573_v2, %v564_v8 }
 0x372   :  { %v430_v51 = vrot.slane %v407_v47, 1 }
 0x373   :  { %v409_v21 = vpop.permute.xlu0 %408 }
 0x374   :  { %v410_v56 = vmul.f32 %v409_v21, %v2676_v38  ;;  %v442_v57 = vsel %vm441_vm9, %v440_v54, %v430_v51 }
 0x376   :  { %v2347_v60 = vpack.c.bf16 %v410_v56, %v442_v57 }
 0x377   :  { %v546_v46 = vpop.permute.xlu0 %545 }
 0x378   :  { %v547_v62 = vmul.f32 %v546_v46, %v2662_v27  ;;  %2349 = vmatpush3.bf16.msk.msra.mxu0 %vm2826_vm11, %v2347_v60 }
 0x379   :  { %2350 = vmatprep.subr.bf16.mxu0 %v2482_v55 }
 0x37a   :  { %v567_v4 = vrot.slane %v547_v62, 1 }
 0x37b   :  { %2226 = vmatmul.mubr.msk.f32.vlgmr.msra.gmra.mrb[2].mxu0 %vm449_vm12, %v386_v63 }
 0x37c   :  { %v575_v7 = vsel %vm441_vm9, %v574_v5, %v567_v4  ;;  %2232 = vmatprep.mubr.msk.f32.mxu0 %vm2484_vm5, %v2483_v3 }
 0x37d   :  { %v2351_v11 = vpack.c.bf16 %v550_v1, %v575_v7 }
 0x37f   :  { %2353 = vmatpush3.bf16.msk.msra.mxu0 %vm2826_vm11, %v2351_v11 }
 0x380   :  { %2354 = vmatprep.subr.bf16.mxu0 %v2482_v55 }
 0x382   :  { %2233 = vmatmul.mubr.msk.f32.vlgmr.msra.gmra.mrb[4].mxu0 %vm449_vm12, %v2851_v12 }
 0x383   :  { %2239 = vmatprep.mubr.msk.f32.mxu0 %vm2484_vm5, %v2483_v3 }
 0x388   :  { %v447_v23 = vpop.permute.xlu0 %446 }
 0x44e   :  { %v522_v20 = vpop.f32.mrb[2].mxu0 }
 0x44f   :  { %v2227_v22 = vpop.f32.mrb[3].mxu0  ;;  %v2858_v24 = vadd.f32 %v522_v20, %v447_v23 }
 0x455   :  { %v648_v28 = vpop.f32.mrb[4].mxu0 }
 0x456   :  { %v652_v29 = vadd.f32 %v648_v28, %v2858_v24  ;;  %v2234_v30 = vpop.f32.mrb[5].mxu0 }
 0x458   :  { %v653_v31 = vrot.slane %v652_v29, 4 }
 0x45a   :  { %v654_v33 = vmax.f32 %v652_v29, %v653_v31 }
 0x45c   :  { %v655_v26 = vrot.slane %v654_v33, 2 }
 0x45e   :  { %v656_v34 = vmax.f32 %v654_v33, %v655_v26 }
 0x460   :  { %v657_v35 = vrot.slane %v656_v34, 1 }
 0x462   :  { %v658_v36 = vmax.f32 %v656_v34, %v657_v35 }
 0x464   :  { %665 = vrot.lane.b32.xlu0 %v658_v36, %s2473_s19  ;;  %662 = vrot.lane.b32.xlu1 %v658_v36, %s2474_s20 }
 0x468   :  { %668 = vrot.lane.b32.xlu0 %v658_v36, %s2477_s23  ;;  %659 = vrot.lane.b32.xlu1 %v658_v36, %s2478_s2 }
 0x46c   :  { %674 = vrot.lane.b32.xlu0 %v658_v36, %s2475_s21  ;;  %671 = vrot.lane.b32.xlu1 %v658_v36, %s2476_s22 }
 0x470   :  { %680 = vrot.lane.b32.xlu0 %v658_v36, %s2480_s27  ;;  %677 = vrot.lane.b32.xlu1 %v658_v36, %s2479_s26 }
 0x4d6   :  { %v666_v14 = vpop.permute.xlu0 %665  ;;  %v663_v37 = vpop.permute.xlu1 %662 }
 0x4d7   :  { %v664_v39 = vmul.f32 %v663_v37, %v2606_v9  ;;  %v667_v40 = vmul.f32 %v666_v14, %v2616_v13 }
 0x4d9   :  { %v684_v42 = vrot.slane %v664_v39, 7  ;;  %v687_v25 = vrot.slane %v667_v40, 6 }
 0x4da   :  { %v669_v19 = vpop.permute.xlu0 %668  ;;  %v660_v41 = vpop.permute.xlu1 %659 }
 0x4db   :  { %v670_v43 = vmul.f32 %v669_v19, %v2634_v17  ;;  %v661_v44 = vmul.f32 %v660_v41, %v2639_v18 }
 0x4dd   :  { %v690_v45 = vrot.slane %v670_v43, 5  ;;  %v701_v47 = vsel %vm432_vm6, %v661_v44, %v684_v42 }
 0x4de   :  { %v702_v48 = vsel %vm138_vm1, %v701_v47, %v687_v25  ;;  %v675_v49 = vpop.permute.xlu0 %674  ;;  %v672_v50 = vpop.permute.xlu1 %671 }
 0x4df   :  { %v703_v16 = vsel %vm435_vm7, %v702_v48, %v690_v45  ;;  %v676_v51 = vmul.f32 %v675_v49, %v2625_v15  ;;  %v673_v52 = vmul.f32 %v672_v50, %v2611_v10 }
 0x4e0   :  { %v704_v21 = vsel %vm140_vm2, %v703_v16, %v658_v36 }
 0x4e1   :  { %v693_v53 = vrot.slane %v673_v52, 3  ;;  %v696_v54 = vrot.slane %v676_v51, 2 }
 0x4e2   :  { %v678_v56 = vpop.permute.xlu1 %677  ;;  %v681_v58 = vpop.permute.xlu0 %680 }
 0x4e3   :  { %v705_v57 = vsel %vm438_vm8, %v704_v21, %v693_v53  ;;  %v679_v59 = vmul.f32 %v678_v56, %v2662_v27  ;;  %v682_v61 = vmul.f32 %v681_v58, %v2676_v38 }
 0x4e4   :  { %v706_v8 = vsel %vm142_vm3, %v705_v57, %v696_v54 }
 0x4e5   :  { %v699_v60 = vrot.slane %v679_v59, 1 }
 0x4e7   :  { %v707_v46 = vsel %vm441_vm9, %v706_v8, %v699_v60 }
 0x4e8   :  { %v2355_v62 = vpack.c.bf16 %v682_v61, %v707_v46 }
 0x4ea   :  { %2357 = vmatpush3.bf16.msk.msra.mxu0 %vm2826_vm11, %v2355_v62 }
 0x4eb   :  { %2358 = vmatprep.subr.bf16.mxu0 %v2482_v55 }
 0x4ed   :  { %2240 = vmatmul.mubr.msk.f32.vlgmr.msra.gmra.mrb[6].mxu0 %vm449_vm12, %v2851_v12 }
 0x4ee   :  { %2246 = vmatprep.mubr.msk.f32.mxu0 %vm2484_vm5, %v2483_v3 }
 0x5c0   :  { %v777_v63 = vpop.f32.mrb[6].mxu0 }
 0x5c1   :  { %v781_v0 = vadd.f32 %v777_v63, %v2858_v24  ;;  %v2241_v1 = vpop.f32.mrb[7].mxu0 }
 0x5c3   :  { %v782_v2 = vrot.slane %v781_v0, 4 }
 0x5c5   :  { %v783_v4 = vmax.f32 %v781_v0, %v782_v2 }
 0x5c7   :  { %v784_v5 = vrot.slane %v783_v4, 2 }
 0x5c9   :  { %v785_v7 = vmax.f32 %v783_v4, %v784_v5 }
 0x5cb   :  { %v786_v11 = vrot.slane %v785_v7, 1 }
 0x5cd   :  { %v787_v20 = vmax.f32 %v785_v7, %v786_v11 }
 0x5cf   :  { %794 = vrot.lane.b32.xlu0 %v787_v20, %s2473_s19  ;;  %791 = vrot.lane.b32.xlu1 %v787_v20, %s2474_s20 }
 0x5d3   :  { %797 = vrot.lane.b32.xlu0 %v787_v20, %s2477_s23  ;;  %788 = vrot.lane.b32.xlu1 %v787_v20, %s2478_s2 }
 0x5d7   :  { %803 = vrot.lane.b32.xlu0 %v787_v20, %s2475_s21  ;;  %800 = vrot.lane.b32.xlu1 %v787_v20, %s2476_s22 }
 0x5db   :  { %809 = vrot.lane.b32.xlu0 %v787_v20, %s2480_s27  ;;  %806 = vrot.lane.b32.xlu1 %v787_v20, %s2479_s26 }
 0x641   :  { %v795_v22 = vpop.permute.xlu0 %794  ;;  %v792_v23 = vpop.permute.xlu1 %791 }
 0x642   :  { %v793_v28 = vmul.f32 %v792_v23, %v2606_v9  ;;  %v796_v29 = vmul.f32 %v795_v22, %v2616_v13 }
 0x644   :  { %v813_v33 = vrot.slane %v793_v28, 7  ;;  %v816_v35 = vrot.slane %v796_v29, 6 }
 0x645   :  { %v798_v30 = vpop.permute.xlu0 %797  ;;  %v789_v31 = vpop.permute.xlu1 %788 }
 0x646   :  { %v799_v26 = vmul.f32 %v798_v30, %v2634_v17  ;;  %v790_v34 = vmul.f32 %v789_v31, %v2639_v18 }
 0x648   :  { %v819_v36 = vrot.slane %v799_v26, 5  ;;  %v830_v14 = vsel %vm432_vm6, %v790_v34, %v813_v33 }
 0x649   :  { %v831_v37 = vsel %vm138_vm1, %v830_v14, %v816_v35  ;;  %v804_v39 = vpop.permute.xlu0 %803  ;;  %v801_v40 = vpop.permute.xlu1 %800 }
 0x64a   :  { %v832_v19 = vsel %vm435_vm7, %v831_v37, %v819_v36  ;;  %v805_v41 = vmul.f32 %v804_v39, %v2625_v15  ;;  %v802_v42 = vmul.f32 %v801_v40, %v2611_v10 }
 0x64b   :  { %v833_v25 = vsel %vm140_vm2, %v832_v19, %v787_v20 }
 0x64c   :  { %v822_v43 = vrot.slane %v802_v42, 3  ;;  %v825_v44 = vrot.slane %v805_v41, 2 }
 0x64d   :  { %v807_v45 = vpop.permute.xlu1 %806  ;;  %v810_v48 = vpop.permute.xlu0 %809 }
 0x64e   :  { %v834_v47 = vsel %vm438_vm8, %v833_v25, %v822_v43  ;;  %v808_v49 = vmul.f32 %v807_v45, %v2662_v27  ;;  %v811_v16 = vmul.f32 %v810_v48, %v2676_v38 }
 0x64f   :  { %v835_v51 = vsel %vm142_vm3, %v834_v47, %v825_v44 }
 0x650   :  { %v828_v50 = vrot.slane %v808_v49, 1 }
 0x652   :  { %v836_v52 = vsel %vm441_vm9, %v835_v51, %v828_v50 }
 0x653   :  { %v2359_v53 = vpack.c.bf16 %v811_v16, %v836_v52 }
 0x655   :  { %2361 = vmatpush3.bf16.msk.msra.mxu0 %vm2826_vm11, %v2359_v53 }
 0x656   :  { %2362 = vmatprep.subr.bf16.mxu0 %v2482_v55 }
 0x658   :  { %2247 = vmatmul.mubr.msk.f32.vlgmr.msra.gmra.mrb[8].mxu0 %vm449_vm12, %v2851_v12 }
 0x659   :  { %2253 = vmatprep.mubr.msk.f32.mxu0 %vm2484_vm5, %v2483_v3 }
 0x72b   :  { %v906_v54 = vpop.f32.mrb[8].mxu0 }
 0x72c   :  { %v910_v21 = vadd.f32 %v906_v54, %v2858_v24  ;;  %v2248_v56 = vpop.f32.mrb[9].mxu0 }
 0x72e   :  { %v911_v57 = vrot.slane %v910_v21, 4 }
 0x730   :  { %v912_v58 = vmax.f32 %v910_v21, %v911_v57 }
 0x732   :  { %v913_v59 = vrot.slane %v912_v58, 2 }
 0x734   :  { %v914_v60 = vmax.f32 %v912_v58, %v913_v59 }
 0x736   :  { %v915_v61 = vrot.slane %v914_v60, 1 }
 0x738   :  { %v916_v8 = vmax.f32 %v914_v60, %v915_v61 }
 0x73a   :  { %923 = vrot.lane.b32.xlu0 %v916_v8, %s2473_s19  ;;  %920 = vrot.lane.b32.xlu1 %v916_v8, %s2474_s20 }
 0x73e   :  { %926 = vrot.lane.b32.xlu0 %v916_v8, %s2477_s23  ;;  %917 = vrot.lane.b32.xlu1 %v916_v8, %s2478_s2 }
 0x742   :  { %932 = vrot.lane.b32.xlu0 %v916_v8, %s2475_s21  ;;  %929 = vrot.lane.b32.xlu1 %v916_v8, %s2476_s22 }
 0x746   :  { %938 = vrot.lane.b32.xlu0 %v916_v8, %s2480_s27  ;;  %935 = vrot.lane.b32.xlu1 %v916_v8, %s2479_s26 }
 0x7ac   :  { %v924_v46 = vpop.permute.xlu0 %923  ;;  %v921_v62 = vpop.permute.xlu1 %920 }
 0x7ad   :  { %v922_v63 = vmul.f32 %v921_v62, %v2606_v9  ;;  %v925_v0 = vmul.f32 %v924_v46, %v2616_v13 }
 0x7af   :  { %v942_v4 = vrot.slane %v922_v63, 7  ;;  %v945_v11 = vrot.slane %v925_v0, 6 }
 0x7b0   :  { %v927_v1 = vpop.permute.xlu0 %926  ;;  %v918_v2 = vpop.permute.xlu1 %917 }
 0x7b1   :  { %v928_v5 = vmul.f32 %v927_v1, %v2634_v17  ;;  %v919_v7 = vmul.f32 %v918_v2, %v2639_v18 }
 0x7b3   :  { %v948_v20 = vrot.slane %v928_v5, 5  ;;  %v959_v22 = vsel %vm432_vm6, %v919_v7, %v942_v4 }
 0x7b4   :  { %v960_v23 = vsel %vm138_vm1, %v959_v22, %v945_v11  ;;  %v933_v28 = vpop.permute.xlu0 %932  ;;  %v930_v29 = vpop.permute.xlu1 %929 }
 0x7b5   :  { %v961_v30 = vsel %vm435_vm7, %v960_v23, %v948_v20  ;;  %v934_v31 = vmul.f32 %v933_v28, %v2625_v15  ;;  %v931_v33 = vmul.f32 %v930_v29, %v2611_v10 }
 0x7b6   :  { %v962_v35 = vsel %vm140_vm2, %v961_v30, %v916_v8 }
 0x7b7   :  { %v951_v26 = vrot.slane %v931_v33, 3  ;;  %v954_v34 = vrot.slane %v934_v31, 2 }
 0x7b8   :  { %v936_v36 = vpop.permute.xlu1 %935  ;;  %v939_v37 = vpop.permute.xlu0 %938 }
 0x7b9   :  { %v963_v14 = vsel %vm438_vm8, %v962_v35, %v951_v26  ;;  %v937_v39 = vmul.f32 %v936_v36, %v2662_v27  ;;  %v940_v19 = vmul.f32 %v939_v37, %v2676_v38 }
 0x7ba   :  { %v964_v41 = vsel %vm142_vm3, %v963_v14, %v954_v34 }
 0x7bb   :  { %v957_v40 = vrot.slane %v937_v39, 1 }
 0x7bd   :  { %v965_v42 = vsel %vm441_vm9, %v964_v41, %v957_v40 }
 0x7be   :  { %v2363_v43 = vpack.c.bf16 %v940_v19, %v965_v42 }
 0x7c0   :  { %2365 = vmatpush3.bf16.msk.msra.mxu0 %vm2826_vm11, %v2363_v43 }
 0x7c1   :  { %2366 = vmatprep.subr.bf16.mxu0 %v2482_v55 }
 0x7c3   :  { %2254 = vmatmul.mubr.msk.f32.vlgmr.msra.gmra.mrb[10].mxu0 %vm449_vm12, %v2851_v12 }
 0x7c4   :  { %2260 = vmatprep.mubr.msk.f32.mxu0 %vm2484_vm5, %v2483_v3 }
 0x896   :  { %v1035_v44 = vpop.f32.mrb[10].mxu0 }
 0x897   :  { %v1039_v25 = vadd.f32 %v1035_v44, %v2858_v24  ;;  %v2255_v45 = vpop.f32.mrb[11].mxu0 }
 0x899   :  { %v1040_v47 = vrot.slane %v1039_v25, 4 }
 0x89b   :  { %v1041_v48 = vmax.f32 %v1039_v25, %v1040_v47 }
 0x89d   :  { %v1042_v49 = vrot.slane %v1041_v48, 2 }
 0x89f   :  { %v1043_v50 = vmax.f32 %v1041_v48, %v1042_v49 }
 0x8a1   :  { %v1044_v16 = vrot.slane %v1043_v50, 1 }
 0x8a3   :  { %v1045_v51 = vmax.f32 %v1043_v50, %v1044_v16 }
 0x8a5   :  { %1052 = vrot.lane.b32.xlu0 %v1045_v51, %s2473_s19  ;;  %1049 = vrot.lane.b32.xlu1 %v1045_v51, %s2474_s20 }
 0x8a9   :  { %1055 = vrot.lane.b32.xlu0 %v1045_v51, %s2477_s23  ;;  %1046 = vrot.lane.b32.xlu1 %v1045_v51, %s2478_s2 }
 0x8ad   :  { %1061 = vrot.lane.b32.xlu0 %v1045_v51, %s2475_s21  ;;  %1058 = vrot.lane.b32.xlu1 %v1045_v51, %s2476_s22 }
 0x8b1   :  { %1067 = vrot.lane.b32.xlu0 %v1045_v51, %s2480_s27  ;;  %1064 = vrot.lane.b32.xlu1 %v1045_v51, %s2479_s26 }
 0x917   :  { %v1053_v52 = vpop.permute.xlu0 %1052  ;;  %v1050_v53 = vpop.permute.xlu1 %1049 }
 0x918   :  { %v1051_v54 = vmul.f32 %v1050_v53, %v2606_v9  ;;  %v1054_v21 = vmul.f32 %v1053_v52, %v2616_v13 }
 0x91a   :  { %v1071_v58 = vrot.slane %v1051_v54, 7  ;;  %v1074_v61 = vrot.slane %v1054_v21, 6 }
 0x91b   :  { %v1056_v56 = vpop.permute.xlu0 %1055  ;;  %v1047_v57 = vpop.permute.xlu1 %1046 }
 0x91c   :  { %v1057_v59 = vmul.f32 %v1056_v56, %v2634_v17  ;;  %v1048_v60 = vmul.f32 %v1047_v57, %v2639_v18 }
 0x91e   :  { %v1077_v8 = vrot.slane %v1057_v59, 5  ;;  %v1088_v46 = vsel %vm432_vm6, %v1048_v60, %v1071_v58 }
 0x91f   :  { %v1089_v62 = vsel %vm138_vm1, %v1088_v46, %v1074_v61  ;;  %v1062_v63 = vpop.permute.xlu0 %1061  ;;  %v1059_v0 = vpop.permute.xlu1 %1058 }
 0x920   :  { %v1090_v1 = vsel %vm435_vm7, %v1089_v62, %v1077_v8  ;;  %v1063_v2 = vmul.f32 %v1062_v63, %v2625_v15  ;;  %v1060_v4 = vmul.f32 %v1059_v0, %v2611_v10 }
 0x921   :  { %v1091_v11 = vsel %vm140_vm2, %v1090_v1, %v1045_v51 }
 0x922   :  { %v1080_v5 = vrot.slane %v1060_v4, 3  ;;  %v1083_v7 = vrot.slane %v1063_v2, 2 }
 0x923   :  { %v1065_v20 = vpop.permute.xlu1 %1064  ;;  %v1068_v23 = vpop.permute.xlu0 %1067 }
 0x924   :  { %v1092_v22 = vsel %vm438_vm8, %v1091_v11, %v1080_v5  ;;  %v1066_v28 = vmul.f32 %v1065_v20, %v2662_v27  ;;  %v1069_v30 = vmul.f32 %v1068_v23, %v2676_v38 }
 0x925   :  { %v1093_v31 = vsel %vm142_vm3, %v1092_v22, %v1083_v7  ;;  %v3027_v22 = vld [vmem:[%s3237_s3 + $0x1] sm:$0x1] }
 0x926   :  { %v1086_v29 = vrot.slane %v1066_v28, 1  ;;  %v3033_v28 = vld [vmem:[%s3237_s3 + $0x2] sm:$0x1] }
 0x928   :  { %v1094_v33 = vsel %vm441_vm9, %v1093_v31, %v1086_v29 }
 0x929   :  { %v2367_v26 = vpack.c.bf16 %v1069_v30, %v1094_v33 }
 0x92b   :  { %2369 = vmatpush3.bf16.msk.msra.mxu0 %vm2826_vm11, %v2367_v26  ;;  %v3039_v26 = vld [vmem:[%s3237_s3 + $0x3] sm:$0x1] }
 0x92c   :  { %2370 = vmatprep.subr.bf16.mxu0 %v2482_v55 }
 0x92e   :  { %2261 = vmatmul.mubr.msk.f32.vlgmr.msra.gmra.mrb[12].mxu0 %vm449_vm12, %v2851_v12 }
 0x92f   :  { %2267 = vmatprep.mubr.msk.f32.mxu0 %vm2484_vm5, %v2483_v3 }
 0xa01   :  { %v1164_v34 = vpop.f32.mrb[12].mxu0 }
 0xa02   :  { %v1168_v35 = vadd.f32 %v1164_v34, %v2858_v24  ;;  %v2262_v36 = vpop.f32.mrb[13].mxu0 }
 0xa04   :  { %v1169_v14 = vrot.slane %v1168_v35, 4 }
 0xa06   :  { %v1170_v37 = vmax.f32 %v1168_v35, %v1169_v14  ;;  %v3045_v35 = vld [vmem:[%s3237_s3] sm:$0x1] }
 0xa08   :  { %v1171_v39 = vrot.slane %v1170_v37, 2 }
 0xa0a   :  { %v1172_v40 = vmax.f32 %v1170_v37, %v1171_v39 }
 0xa0c   :  { %v1173_v19 = vrot.slane %v1172_v40, 1 }
 0xa0e   :  { %v1174_v41 = vmax.f32 %v1172_v40, %v1173_v19 }
 0xa10   :  { %1181 = vrot.lane.b32.xlu0 %v1174_v41, %s2473_s19  ;;  %1178 = vrot.lane.b32.xlu1 %v1174_v41, %s2474_s20 }
 0xa14   :  { %1184 = vrot.lane.b32.xlu0 %v1174_v41, %s2477_s23  ;;  %1175 = vrot.lane.b32.xlu1 %v1174_v41, %s2478_s2 }
 0xa18   :  { %1190 = vrot.lane.b32.xlu0 %v1174_v41, %s2475_s21  ;;  %1187 = vrot.lane.b32.xlu1 %v1174_v41, %s2476_s22 }
 0xa1c   :  { %1196 = vrot.lane.b32.xlu0 %v1174_v41, %s2480_s27  ;;  %1193 = vrot.lane.b32.xlu1 %v1174_v41, %s2479_s26 }
 0xa82   :  { %v1182_v42 = vpop.permute.xlu0 %1181  ;;  %v1179_v43 = vpop.permute.xlu1 %1178 }
 0xa83   :  { %v1180_v44 = vmul.f32 %v1179_v43, %v2606_v9  ;;  %v1183_v25 = vmul.f32 %v1182_v42, %v2616_v13  ;;  %v3054_v43 = vld [vmem:[%s3237_s3 + $0x6] sm:$0x1] }
 0xa85   :  { %v1200_v48 = vrot.slane %v1180_v44, 7  ;;  %v1203_v16 = vrot.slane %v1183_v25, 6  ;;  %v3060_v25 = vld [vmem:[%s3237_s3 + $0x5] sm:$0x1] }
 0xa86   :  { %v1185_v45 = vpop.permute.xlu0 %1184  ;;  %v1176_v47 = vpop.permute.xlu1 %1175 }
 0xa87   :  { %v1186_v49 = vmul.f32 %v1185_v45, %v2634_v17  ;;  %v1177_v50 = vmul.f32 %v1176_v47, %v2639_v18 }
 0xa89   :  { %v1206_v51 = vrot.slane %v1186_v49, 5  ;;  %v1217_v52 = vsel %vm432_vm6, %v1177_v50, %v1200_v48 }
 0xa8a   :  { %v1218_v53 = vsel %vm138_vm1, %v1217_v52, %v1203_v16  ;;  %v1191_v54 = vpop.permute.xlu0 %1190  ;;  %v1188_v21 = vpop.permute.xlu1 %1187  ;;  %v3068_v52 = vld [vmem:[%s3237_s3 + $0x7] sm:$0x1] }
 0xa8b   :  { %v1219_v56 = vsel %vm435_vm7, %v1218_v53, %v1206_v51  ;;  %v1192_v9 = vmul.f32 %v1191_v54, %v2625_v15  ;;  %v1189_v13 = vmul.f32 %v1188_v21, %v2611_v10  ;;  %v3074_v21 = vld [vmem:[%s3237_s3 + $0x8] sm:$0x1] }
 0xa8c   :  { %v1220_v17 = vsel %vm140_vm2, %v1219_v56, %v1174_v41 }
 0xa8d   :  { %v1209_v57 = vrot.slane %v1189_v13, 3  ;;  %v1212_v58 = vrot.slane %v1192_v9, 2 }
 0xa8e   :  { %v1194_v59 = vpop.permute.xlu1 %1193  ;;  %v1197_v60 = vpop.permute.xlu0 %1196 }
 0xa8f   :  { %v1221_v18 = vsel %vm438_vm8, %v1220_v17, %v1209_v57  ;;  %v1195_v61 = vmul.f32 %v1194_v59, %v2662_v27  ;;  %v1198_v46 = vmul.f32 %v1197_v60, %v2676_v38 }
 0xa90   :  { %v1222_v62 = vsel %vm142_vm3, %v1221_v18, %v1212_v58 }
 0xa91   :  { %v1215_v8 = vrot.slane %v1195_v61, 1 }
 0xa93   :  { %v1223_v63 = vsel %vm441_vm9, %v1222_v62, %v1215_v8 }
 0xa94   :  { %v2371_v15 = vpack.c.bf16 %v1198_v46, %v1223_v63 }
 0xa96   :  { %2373 = vmatpush3.bf16.msk.msra.mxu0 %vm2826_vm11, %v2371_v15 }
 0xa97   :  { %2374 = vmatprep.subr.bf16.mxu0 %v2482_v55 }
 0xa99   :  { %2268 = vmatmul.mubr.msk.f32.vlgmr.msra.gmra.mrb[14].mxu0 %vm449_vm12, %v2851_v12 }
 0xa9a   :  { %2274 = vmatprep.mubr.msk.f32.mxu0 %vm2484_vm5, %v2483_v3 }
 0xb6c   :  { %v1293_v10 = vpop.f32.mrb[14].mxu0 }
 0xb6d   :  { %v1297_v27 = vadd.f32 %v1293_v10, %v2858_v24  ;;  %v2269_v38 = vpop.f32.mrb[15].mxu0 }
 0xb6f   :  { %v1298_v0 = vrot.slane %v1297_v27, 4 }
 0xb71   :  { %v1299_v1 = vmax.f32 %v1297_v27, %v1298_v0 }
 0xb73   :  { %v1300_v2 = vrot.slane %v1299_v1, 2 }
 0xb75   :  { %v1301_v4 = vmax.f32 %v1299_v1, %v1300_v2 }
 0xb77   :  { %v1302_v5 = vrot.slane %v1301_v4, 1 }
 0xb79   :  { %v1303_v7 = vmax.f32 %v1301_v4, %v1302_v5 }
 0xb7b   :  { %1310 = vrot.lane.b32.xlu0 %v1303_v7, %s2473_s19  ;;  %1307 = vrot.lane.b32.xlu1 %v1303_v7, %s2474_s20 }
 0xb7f   :  { %1313 = vrot.lane.b32.xlu0 %v1303_v7, %s2477_s23  ;;  %1304 = vrot.lane.b32.xlu1 %v1303_v7, %s2478_s2 }
 0xb83   :  { %1319 = vrot.lane.b32.xlu0 %v1303_v7, %s2475_s21  ;;  %1316 = vrot.lane.b32.xlu1 %v1303_v7, %s2476_s22 }
 0xb87   :  { %1325 = vrot.lane.b32.xlu0 %v1303_v7, %s2480_s27  ;;  %1322 = vrot.lane.b32.xlu1 %v1303_v7, %s2479_s26 }
 0xbed   :  { %v1311_v11 = vpop.permute.xlu0 %1310  ;;  %v1308_v20 = vpop.permute.xlu1 %1307 }
 0xbee   :  { %v1309_v23 = vmul.f32 %v3027_v22, %v1308_v20  ;;  %v1312_v29 = vmul.f32 %v3033_v28, %v1311_v11 }
 0xbf0   :  { %v1329_v33 = vrot.slane %v1309_v23, 7  ;;  %v1332_v14 = vrot.slane %v1312_v29, 6 }
 0xbf1   :  { %v1314_v30 = vpop.permute.xlu0 %1313  ;;  %v1305_v31 = vpop.permute.xlu1 %1304 }
 0xbf2   :  { %v1315_v34 = vmul.f32 %v3039_v26, %v1314_v30  ;;  %v1306_v36 = vmul.f32 %v3045_v35, %v1305_v31 }
 0xbf4   :  { %v1335_v37 = vrot.slane %v1315_v34, 5  ;;  %v1346_v39 = vsel %vm432_vm6, %v1306_v36, %v1329_v33 }
 0xbf5   :  { %v1347_v40 = vsel %vm138_vm1, %v1346_v39, %v1332_v14  ;;  %v1320_v19 = vpop.permute.xlu0 %1319  ;;  %v1317_v41 = vpop.permute.xlu1 %1316 }
 0xbf6   :  { %v1348_v42 = vsel %vm435_vm7, %v1347_v40, %v1335_v37  ;;  %v1321_v44 = vmul.f32 %v3054_v43, %v1320_v19  ;;  %v1318_v45 = vmul.f32 %v3060_v25, %v1317_v41 }
 0xbf7   :  { %v1349_v49 = vsel %vm140_vm2, %v1348_v42, %v1303_v7 }
 0xbf8   :  { %v1338_v47 = vrot.slane %v1318_v45, 3  ;;  %v1341_v48 = vrot.slane %v1321_v44, 2 }
 0xbf9   :  { %v1323_v50 = vpop.permute.xlu1 %1322  ;;  %v1326_v51 = vpop.permute.xlu0 %1325 }
 0xbfa   :  { %v1350_v16 = vsel %vm438_vm8, %v1349_v49, %v1338_v47  ;;  %v1324_v53 = vmul.f32 %v3068_v52, %v1323_v50  ;;  %v1327_v56 = vmul.f32 %v3074_v21, %v1326_v51 }
 0xbfb   :  { %v1351_v9 = vsel %vm142_vm3, %v1350_v16, %v1341_v48 }
 0xbfc   :  { %v1344_v54 = vrot.slane %v1324_v53, 1 }
 0xbfe   :  { %v1352_v13 = vsel %vm441_vm9, %v1351_v9, %v1344_v54 }
 0xbff   :  { %v2375_v57 = vpack.c.bf16 %v1327_v56, %v1352_v13 }
 0xc01   :  { %2377 = vmatpush3.bf16.msk.msra.mxu0 %vm2826_vm11, %v2375_v57 }
 0xc02   :  { %2382 = vmatprep.subr.bf16.mxu0 %v2482_v55 }
 0xc04   :  { %2275 = vmatmul.mubr.msk.f32.vlgmr.msra.gmra.mrb[16].mxu0 %vm449_vm12, %v2851_v12 }
 0xc05   :  { %2288 = vmatprep.mubr.msk.f32.mxu0 %vm2484_vm5, %v2483_v3 }
 0xcd7   :  { %v1422_v58 = vpop.f32.mrb[16].mxu0 }
 0xcd8   :  { %v1426_v17 = vadd.f32 %v1422_v58, %v2858_v24  ;;  %v2276_v59 = vpop.f32.mrb[17].mxu0 }
 0xcda   :  { %v1427_v18 = vrot.slane %v1426_v17, 4 }
 0xcdc   :  { %v1428_v60 = vmax.f32 %v1426_v17, %v1427_v18 }
 0xcde   :  { %v1429_v61 = vrot.slane %v1428_v60, 2 }
 0xce0   :  { %v1430_v8 = vmax.f32 %v1428_v60, %v1429_v61 }
 0xce2   :  { %v1431_v46 = vrot.slane %v1430_v8, 1 }
 0xce4   :  { %v1432_v62 = vmax.f32 %v1430_v8, %v1431_v46 }
 0xce6   :  { %1439 = vrot.lane.b32.xlu0 %v1432_v62, %s2473_s19  ;;  %1436 = vrot.lane.b32.xlu1 %v1432_v62, %s2474_s20 }
 0xcea   :  { %1442 = vrot.lane.b32.xlu0 %v1432_v62, %s2477_s23  ;;  %1433 = vrot.lane.b32.xlu1 %v1432_v62, %s2478_s2 }
 0xcee   :  { %1448 = vrot.lane.b32.xlu0 %v1432_v62, %s2475_s21  ;;  %1445 = vrot.lane.b32.xlu1 %v1432_v62, %s2476_s22 }
 0xcf2   :  { %1454 = vrot.lane.b32.xlu0 %v1432_v62, %s2480_s27  ;;  %1451 = vrot.lane.b32.xlu1 %v1432_v62, %s2479_s26 }
 0xd58   :  { %v1440_v63 = vpop.permute.xlu0 %1439  ;;  %v1437_v15 = vpop.permute.xlu1 %1436 }
 0xd59   :  { %v1438_v10 = vmul.f32 %v3027_v22, %v1437_v15  ;;  %v1441_v27 = vmul.f32 %v3033_v28, %v1440_v63 }
 0xd5b   :  { %v1458_v1 = vrot.slane %v1438_v10, 7  ;;  %v1461_v5 = vrot.slane %v1441_v27, 6 }
 0xd5c   :  { %v1443_v38 = vpop.permute.xlu0 %1442  ;;  %v1434_v0 = vpop.permute.xlu1 %1433 }
 0xd5d   :  { %v1444_v2 = vmul.f32 %v3039_v26, %v1443_v38  ;;  %v1435_v4 = vmul.f32 %v3045_v35, %v1434_v0 }
 0xd5f   :  { %v1464_v7 = vrot.slane %v1444_v2, 5  ;;  %v1475_v11 = vsel %vm432_vm6, %v1435_v4, %v1458_v1 }
 0xd60   :  { %v1476_v20 = vsel %vm138_vm1, %v1475_v11, %v1461_v5  ;;  %v1449_v23 = vpop.permute.xlu0 %1448  ;;  %v1446_v29 = vpop.permute.xlu1 %1445 }
 0xd61   :  { %v1477_v30 = vsel %vm435_vm7, %v1476_v20, %v1464_v7  ;;  %v1450_v31 = vmul.f32 %v3054_v43, %v1449_v23  ;;  %v1447_v33 = vmul.f32 %v3060_v25, %v1446_v29 }
 0xd62   :  { %v1478_v14 = vsel %vm140_vm2, %v1477_v30, %v1432_v62 }
 0xd63   :  { %v1467_v34 = vrot.slane %v1447_v33, 3  ;;  %v1470_v36 = vrot.slane %v1450_v31, 2 }
 0xd64   :  { %v1452_v37 = vpop.permute.xlu1 %1451  ;;  %v1455_v40 = vpop.permute.xlu0 %1454 }
 0xd65   :  { %v1479_v39 = vsel %vm438_vm8, %v1478_v14, %v1467_v34  ;;  %v1453_v19 = vmul.f32 %v3068_v52, %v1452_v37  ;;  %v1456_v42 = vmul.f32 %v3074_v21, %v1455_v40 }
 0xd66   :  { %v1480_v44 = vsel %vm142_vm3, %v1479_v39, %v1470_v36 }
 0xd67   :  { %v1473_v41 = vrot.slane %v1453_v19, 1 }
 0xd69   :  { %v1481_v45 = vsel %vm441_vm9, %v1480_v44, %v1473_v41 }
 0xd6a   :  { %v2379_v47 = vpack.c.bf16 %v1456_v42, %v1481_v45 }
 0xd6c   :  { %2381 = vmatpush3.bf16.msk.msra.mxu1 %vm2826_vm11, %v2379_v47 }
 0xd6d   :  { %2386 = vmatprep.subr.bf16.mxu1 %v2482_v55 }
 0xd6f   :  { %2282 = vmatmul.mubr.msk.f32.vlgmr.msra.gmra.mrb[2].mxu1 %vm449_vm12, %v2851_v12 }
 0xd70   :  { %2295 = vmatprep.mubr.msk.f32.mxu1 %vm2484_vm5, %v2483_v3 }
 0xe42   :  { %v1551_v48 = vpop.f32.mrb[2].mxu1 }
 0xe43   :  { %v1555_v49 = vadd.f32 %v1551_v48, %v2858_v24  ;;  %v2283_v50 = vpop.f32.mrb[3].mxu1 }
 0xe45   :  { %v1556_v16 = vrot.slane %v1555_v49, 4 }
 0xe47   :  { %v1557_v51 = vmax.f32 %v1555_v49, %v1556_v16 }
 0xe49   :  { %v1558_v53 = vrot.slane %v1557_v51, 2 }
 0xe4b   :  { %v1559_v54 = vmax.f32 %v1557_v51, %v1558_v53 }
 0xe4d   :  { %v1560_v56 = vrot.slane %v1559_v54, 1 }
 0xe4f   :  { %v1561_v9 = vmax.f32 %v1559_v54, %v1560_v56 }
 0xe51   :  { %1568 = vrot.lane.b32.xlu0 %v1561_v9, %s2473_s19  ;;  %1565 = vrot.lane.b32.xlu1 %v1561_v9, %s2474_s20 }
 0xe55   :  { %1571 = vrot.lane.b32.xlu0 %v1561_v9, %s2477_s23  ;;  %1562 = vrot.lane.b32.xlu1 %v1561_v9, %s2478_s2 }
 0xe59   :  { %1577 = vrot.lane.b32.xlu0 %v1561_v9, %s2475_s21  ;;  %1574 = vrot.lane.b32.xlu1 %v1561_v9, %s2476_s22 }
 0xe5d   :  { %1583 = vrot.lane.b32.xlu0 %v1561_v9, %s2480_s27  ;;  %1580 = vrot.lane.b32.xlu1 %v1561_v9, %s2479_s26 }
 0xec3   :  { %v1569_v13 = vpop.permute.xlu0 %1568  ;;  %v1566_v57 = vpop.permute.xlu1 %1565 }
 0xec4   :  { %v1567_v58 = vmul.f32 %v3027_v22, %v1566_v57  ;;  %v1570_v17 = vmul.f32 %v3033_v28, %v1569_v13 }
 0xec6   :  { %v1587_v60 = vrot.slane %v1567_v58, 7  ;;  %v1590_v46 = vrot.slane %v1570_v17, 6 }
 0xec7   :  { %v1572_v59 = vpop.permute.xlu0 %1571  ;;  %v1563_v18 = vpop.permute.xlu1 %1562 }
 0xec8   :  { %v1573_v61 = vmul.f32 %v3039_v26, %v1572_v59  ;;  %v1564_v8 = vmul.f32 %v3045_v35, %v1563_v18 }
 0xeca   :  { %v1593_v62 = vrot.slane %v1573_v61, 5  ;;  %v1604_v63 = vsel %vm432_vm6, %v1564_v8, %v1587_v60 }
 0xecb   :  { %v1605_v15 = vsel %vm138_vm1, %v1604_v63, %v1590_v46  ;;  %v1578_v10 = vpop.permute.xlu0 %1577  ;;  %v1575_v27 = vpop.permute.xlu1 %1574 }
 0xecc   :  { %v1606_v38 = vsel %vm435_vm7, %v1605_v15, %v1593_v62  ;;  %v1579_v0 = vmul.f32 %v3054_v43, %v1578_v10  ;;  %v1576_v1 = vmul.f32 %v3060_v25, %v1575_v27 }
 0xecd   :  { %v1607_v5 = vsel %vm140_vm2, %v1606_v38, %v1561_v9 }
 0xece   :  { %v1596_v2 = vrot.slane %v1576_v1, 3  ;;  %v1599_v4 = vrot.slane %v1579_v0, 2 }
 0xecf   :  { %v1581_v7 = vpop.permute.xlu1 %1580  ;;  %v1584_v20 = vpop.permute.xlu0 %1583 }
 0xed0   :  { %v1608_v11 = vsel %vm438_vm8, %v1607_v5, %v1596_v2  ;;  %v1582_v23 = vmul.f32 %v3068_v52, %v1581_v7  ;;  %v1585_v30 = vmul.f32 %v3074_v21, %v1584_v20 }
 0xed1   :  { %v1609_v31 = vsel %vm142_vm3, %v1608_v11, %v1599_v4 }
 0xed2   :  { %v1602_v29 = vrot.slane %v1582_v23, 1 }
 0xed4   :  { %v1610_v33 = vsel %vm441_vm9, %v1609_v31, %v1602_v29 }
 0xed5   :  { %v2383_v34 = vpack.c.bf16 %v1585_v30, %v1610_v33 }
 0xed7   :  { %2385 = vmatpush3.bf16.msk.msra.mxu0 %vm2826_vm11, %v2383_v34 }
 0xed8   :  { %2390 = vmatprep.subr.bf16.mxu0 %v2482_v55 }
 0xeda   :  { %2289 = vmatmul.mubr.msk.f32.vlgmr.msra.gmra.mrb[18].mxu0 %vm449_vm12, %v2851_v12 }
 0xedb   :  { %2302 = vmatprep.mubr.msk.f32.mxu0 %vm2484_vm5, %v2483_v3 }
 0xfad   :  { %v1680_v36 = vpop.f32.mrb[18].mxu0 }
 0xfae   :  { %v1684_v14 = vadd.f32 %v1680_v36, %v2858_v24  ;;  %v2290_v37 = vpop.f32.mrb[19].mxu0 }
 0xfb0   :  { %v1685_v39 = vrot.slane %v1684_v14, 4 }
 0xfb2   :  { %v1686_v40 = vmax.f32 %v1684_v14, %v1685_v39 }
 0xfb4   :  { %v1687_v19 = vrot.slane %v1686_v40, 2 }
 0xfb6   :  { %v1688_v41 = vmax.f32 %v1686_v40, %v1687_v19 }
 0xfb8   :  { %v1689_v42 = vrot.slane %v1688_v41, 1 }
 0xfba   :  { %v1690_v44 = vmax.f32 %v1688_v41, %v1689_v42 }
 0xfbc   :  { %1697 = vrot.lane.b32.xlu0 %v1690_v44, %s2473_s19  ;;  %1694 = vrot.lane.b32.xlu1 %v1690_v44, %s2474_s20 }
 0xfc0   :  { %1700 = vrot.lane.b32.xlu0 %v1690_v44, %s2477_s23  ;;  %1691 = vrot.lane.b32.xlu1 %v1690_v44, %s2478_s2 }
 0xfc4   :  { %1706 = vrot.lane.b32.xlu0 %v1690_v44, %s2475_s21  ;;  %1703 = vrot.lane.b32.xlu1 %v1690_v44, %s2476_s22 }
 0xfc8   :  { %1712 = vrot.lane.b32.xlu0 %v1690_v44, %s2480_s27  ;;  %1709 = vrot.lane.b32.xlu1 %v1690_v44, %s2479_s26 }
0x102e   :  { %v1698_v55 = vpop.permute.xlu0 %1697  ;;  %v1695_v45 = vpop.permute.xlu1 %1694 }
0x102f   :  { %v1696_v47 = vmul.f32 %v3027_v22, %v1695_v45  ;;  %v1699_v48 = vmul.f32 %v3033_v28, %v1698_v55 }
0x1031   :  { %v1716_v16 = vrot.slane %v1696_v47, 7  ;;  %v1719_v54 = vrot.slane %v1699_v48, 6 }
0x1032   :  { %v1701_v49 = vpop.permute.xlu0 %1700  ;;  %v1692_v50 = vpop.permute.xlu1 %1691 }
0x1033   :  { %v1702_v51 = vmul.f32 %v3039_v26, %v1701_v49  ;;  %v1693_v53 = vmul.f32 %v3045_v35, %v1692_v50 }
0x1035   :  { %v1722_v56 = vrot.slane %v1702_v51, 5  ;;  %v1733_v9 = vsel %vm432_vm6, %v1693_v53, %v1716_v16 }
0x1036   :  { %v1734_v13 = vsel %vm138_vm1, %v1733_v9, %v1719_v54  ;;  %v1707_v57 = vpop.permute.xlu0 %1706  ;;  %v1704_v58 = vpop.permute.xlu1 %1703 }
0x1037   :  { %v1735_v17 = vsel %vm435_vm7, %v1734_v13, %v1722_v56  ;;  %v1708_v59 = vmul.f32 %v3054_v43, %v1707_v57  ;;  %v1705_v18 = vmul.f32 %v3060_v25, %v1704_v58 }
0x1038   :  { %v1736_v8 = vsel %vm140_vm2, %v1735_v17, %v1690_v44 }
0x1039   :  { %v1725_v60 = vrot.slane %v1705_v18, 3  ;;  %v1728_v61 = vrot.slane %v1708_v59, 2 }
0x103a   :  { %v1710_v46 = vpop.permute.xlu1 %1709  ;;  %v1713_v63 = vpop.permute.xlu0 %1712 }
0x103b   :  { %v1737_v62 = vsel %vm438_vm8, %v1736_v8, %v1725_v60  ;;  %v1711_v15 = vmul.f32 %v3068_v52, %v1710_v46  ;;  %v1714_v27 = vmul.f32 %v3074_v21, %v1713_v63 }
0x103c   :  { %v1738_v38 = vsel %vm142_vm3, %v1737_v62, %v1728_v61 }
0x103d   :  { %v1731_v10 = vrot.slane %v1711_v15, 1 }
0x103f   :  { %v1739_v0 = vsel %vm441_vm9, %v1738_v38, %v1731_v10 }
0x1040   :  { %v2387_v1 = vpack.c.bf16 %v1714_v27, %v1739_v0 }
0x1042   :  { %2389 = vmatpush3.bf16.msk.msra.mxu1 %vm2826_vm11, %v2387_v1 }
0x1043   :  { %2305 = vmatprep.subr.mxu1 %v2483_v3 }
0x1045   :  { %2296 = vmatmul.mubr.msk.f32.vlgmr.msra.gmra.mrb[4].mxu1 %vm449_vm12, %v2851_v12 }
0x1046   :  { %2307 = vmatprep.mubr.msk.f32.mxu1 %vm2484_vm5, %v2483_v3 }
0x1118   :  { %v1809_v2 = vpop.f32.mrb[4].mxu1 }
0x1119   :  { %v1813_v4 = vadd.f32 %v1809_v2, %v2858_v24  ;;  %v2297_v5 = vpop.f32.mrb[5].mxu1 }
0x111b   :  { %v1814_v7 = vrot.slane %v1813_v4, 4 }
0x111d   :  { %v1815_v11 = vmax.f32 %v1813_v4, %v1814_v7 }
0x111f   :  { %v1816_v20 = vrot.slane %v1815_v11, 2 }
0x1121   :  { %v1817_v23 = vmax.f32 %v1815_v11, %v1816_v20 }
0x1123   :  { %v1818_v29 = vrot.slane %v1817_v23, 1 }
0x1125   :  { %v1819_v30 = vmax.f32 %v1817_v23, %v1818_v29 }
0x1127   :  { %1826 = vrot.lane.b32.xlu0 %v1819_v30, %s2473_s19  ;;  %1823 = vrot.lane.b32.xlu1 %v1819_v30, %s2474_s20 }
0x112b   :  { %1829 = vrot.lane.b32.xlu0 %v1819_v30, %s2477_s23  ;;  %1820 = vrot.lane.b32.xlu1 %v1819_v30, %s2478_s2  ;;  %s1945_s23 = sld [smem:[#allocation3]] }
0x112c   :  { %s1947_s2 = sld [smem:[#allocation4]] }
0x112f   :  { %1835 = vrot.lane.b32.xlu0 %v1819_v30, %s2475_s21  ;;  %1832 = vrot.lane.b32.xlu1 %v1819_v30, %s2476_s22  ;;  %s2161_s22 = sld [smem:[#allocation3 + $0x1]] }
0x1131   :  { %s2159_s8 = sshll.u32 %s1945_s23, 3 }
0x1132   :  { %s1948_s24 = sadd.s32 %s2159_s8, %s1947_s2 }
0x1133   :  { %1841 = vrot.lane.b32.xlu0 %v1819_v30, %s2480_s27  ;;  %1838 = vrot.lane.b32.xlu1 %v1819_v30, %s2479_s26  ;;  %s2163_s26 = sld [smem:[#allocation4 + $0x1]] }
0x1135   :  { %s2162_s27 = sshll.u32 %s2161_s22, 3 }
0x1136   :  { %s1955_s18 = sadd.s32 64, %s2162_s27 }
0x1139   :  { %s1957_s25 = sadd.s32 %s2163_s26, %s1955_s18 }
0x113a   :  { %v1958_v13 = vstv %s1957_s25 }
0x113b   :  { %vm1959_vm14 = vcmp.eq.s32.totalorder %v1944_v32, %v1958_v13 }
0x113c   :  { %v2164_v17 = vsel %vm1959_vm14, 1.0, %v2483_v3 }
0x1199   :  { %v1827_v12 = vpop.permute.xlu0 %1826  ;;  %v1824_v31 = vpop.permute.xlu1 %1823 }
0x119a   :  { %v1825_v33 = vmul.f32 %v3027_v22, %v1824_v31  ;;  %v1828_v34 = vmul.f32 %v3033_v28, %v1827_v12 }
0x119c   :  { %v1845_v37 = vrot.slane %v1825_v33, 7  ;;  %v1848_v19 = vrot.slane %v1828_v34, 6 }
0x119d   :  { %v1830_v36 = vpop.permute.xlu0 %1829  ;;  %v1821_v14 = vpop.permute.xlu1 %1820 }
0x119e   :  { %v1831_v39 = vmul.f32 %v3039_v26, %v1830_v36  ;;  %v1822_v40 = vmul.f32 %v3045_v35, %v1821_v14 }
0x11a0   :  { %v1851_v41 = vrot.slane %v1831_v39, 5  ;;  %v1862_v42 = vsel %vm432_vm6, %v1822_v40, %v1845_v37 }
0x11a1   :  { %v1863_v44 = vsel %vm138_vm1, %v1862_v42, %v1848_v19  ;;  %v1836_v55 = vpop.permute.xlu0 %1835  ;;  %v1833_v45 = vpop.permute.xlu1 %1832 }
0x11a2   :  { %v1864_v47 = vsel %vm435_vm7, %v1863_v44, %v1851_v41  ;;  %v1837_v22 = vmul.f32 %v3054_v43, %v1836_v55  ;;  %v1834_v28 = vmul.f32 %v3060_v25, %v1833_v45  ;;  %v2420_v25 = vld [vmem:[%s3242_s9] sm:$0xff] }
0x11a3   :  { %v1865_v26 = vsel %vm140_vm2, %v1864_v47, %v1819_v30 }
0x11a4   :  { %v1854_v48 = vrot.slane %v1834_v28, 3  ;;  %v1857_v49 = vrot.slane %v1837_v22, 2 }
0x11a5   :  { %v1839_v50 = vpop.permute.xlu1 %1838  ;;  %v1842_v16 = vpop.permute.xlu0 %1841 }
0x11a6   :  { %v1866_v35 = vsel %vm438_vm8, %v1865_v26, %v1854_v48  ;;  %v1840_v51 = vmul.f32 %v3068_v52, %v1839_v50  ;;  %v1843_v54 = vmul.f32 %v3074_v21, %v1842_v16  ;;  %v2033_v52 = vld [vmem:[%s3244_s11] sm:$0xff]  ;;  %v1949_v21 = vstv %s1948_s24 }
0x11a7   :  { %v1867_v56 = vsel %vm142_vm3, %v1866_v35, %v1857_v49  ;;  %vm1950_vm13 = vcmp.eq.s32.totalorder %v1944_v32, %v1949_v21 }
0x11a8   :  { %v1860_v53 = vrot.slane %v1840_v51, 1  ;;  %v2160_v58 = vsel %vm1950_vm13, 1.0, %v2483_v3 }
0x11a9   :  { %v1962_v60 = vsel %vm432_vm6, %v2160_v58, %v2164_v17 }
0x11aa   :  { %v1868_v9 = vsel %vm441_vm9, %v1867_v56, %v1860_v53 }
0x11ab   :  { %v2391_v43 = vpack.c.bf16 %v1843_v54, %v1868_v9 }
0x11ad   :  { %2393 = vmatpush3.bf16.msk.msra.mxu0 %vm2826_vm11, %v2391_v43 }
0x11ae   :  { %2310 = vmatprep.subr.mxu0 %v2483_v3 }
0x11b0   :  { %2303 = vmatmul.mubr.msk.f32.vlgmr.msra.gmra.mrb[20].mxu0 %vm449_vm12, %v2420_v25 }
0x11b1   :  { %2312 = vmatprep.mubr.msk.f32.mxu0 %vm2484_vm5, %v2483_v3  ;;  %2311 = vmatpush3.msra.mxu0 %v2033_v52 }
0x1283   :  { %v1938_v57 = vpop.f32.mrb[20].mxu0 }
0x1284   :  { %v1942_v59 = vadd.f32 %v1938_v57, %v2858_v24  ;;  %v2304_v18 = vpop.f32.mrb[21].mxu0 }
0x1286   :  { %2306 = vmatpush3.xpose.msra.mxu1 %v1942_v59 }
0x1289   :  { %2308 = vmatmul.mubr.f32.vlgmr.msra.gmra.mrb[6].mxu1 %v1962_v60 }
0x135c   :  { %v2029_v61 = vpop.f32.mrb[6].mxu1 }
0x135d   :  { %v2309_v8 = vpop.f32.mrb[7].mxu1  ;;  %2313 = vmatmul.mubr.msk.f32.vlgmr.msra.gmra.mrb[22].mxu0 %vm2041_vm15, %v2029_v61 }
0x1430   :  { %v2111_v46 = vpop.f32.mrb[22].mxu0 }
0x1431   :  { %v2112_v3 = vadd.f32 %v2165_v6, %v2111_v46  ;;  %v2314_v62 = vpop.f32.mrb[23].mxu0 }
0x1433   :  { %2116 = vst.msk [vmem:[#allocation6] sm:$0x3] %vm2115_vm0, %v2112_v3 }
0x1434   :  { %2456 = shalt.err (!%p2453_p0)
}
0x1435   :  { %s2457_s16 = scalar_lea.hbm %s3246_s13, 32 }
0x1436   :  { %p2458_p1 = scmp.ne.s32.totalorder %s3246_s13, %s2457_s16  ;;  %p2461_p2 = scmp.lt.u32.totalorder %s2457_s16, %s3246_s13 }
0x1438   :  { %p2463_p3 = pnand %p2461_p2, %p2458_p1 }
0x143a   :  { %2466 = shalt.err (!%p2463_p3)
}
0x143b   :  { %2126 = dma.vmem_to_hbm [thread:$0]  %s2124_s29, 32, %s3246_s13, [#allocation7]  }
0x143c   :  { %2469 = dma.done.wait [#allocation7], 32  }
0x143d   :  { %2470 = vsyncadd [#allocation7], 4294967264 }
0x143e   :  { %2130 = vsyncpa [#allocation7], 1 }

</bundles_post_ra>
